<compile_context>
chip_gen: v6e
topology: v6e:2x2x1
jax: 0.10.0
libtpu: 0.0.40
codegen_flags: <defaults>
</compile_context>

<pallas_src>
import functools

import jax
import jax.numpy as jnp
from jax import lax
from jax.experimental import pallas as pl
from jax.experimental.pallas import tpu as pltpu

BN_EPS = 1e-5


# --------------------------------------------------------------------------- #
# Kernel
# --------------------------------------------------------------------------- #
def node_block_kernel(node_ref, eattr_ref, row_ref, col_ref,
                      w1g_ref, w1e_ref, b1_ref, w2_ref, b2_ref, w3_ref, b3_ref,
                      v1n_ref, v1a_ref, c1_ref, v2_ref, c2_ref, v3_ref, c3_ref,
                      out_ref, *, residual):
    node = node_ref[...]                                   # (N, P+A) f32  [pos | ang]
    eattr = eattr_ref[...]                                 # (E, Ed)  f32
    E = eattr.shape[0]
    N = node.shape[0]

    # ---- gather node[row] via a one-hot matmul (MXU) ------------------------
    gather_oh = (row_ref[...] ==
                 lax.broadcasted_iota(jnp.int32, (E, N), 1)).astype(jnp.float32)  # (E, N)
    g = jnp.dot(gather_oh, node, preferred_element_type=jnp.float32)              # (E, P+A)

    # ---- edge-stage MLPs: [pos_mlp_1 | ang_mlp_1] fused, BN folded ----------
    h = (jnp.dot(g, w1g_ref[...], preferred_element_type=jnp.float32)
         + jnp.dot(eattr, w1e_ref[...], preferred_element_type=jnp.float32)
         + b1_ref[...])                                                            # (E, 2H)
    h = jnp.maximum(h, 0.0)
    h = jnp.maximum(jnp.dot(h, w2_ref[...], preferred_element_type=jnp.float32)
                    + b2_ref[...], 0.0)                                            # (E, 2H)
    msgs = jnp.dot(h, w3_ref[...], preferred_element_type=jnp.float32) + b3_ref[...]  # (E, 2Ed)

    # ---- scatter-mean over edges grouped by col ------------------------------
    # Exact 0/1 one-hot into the MXU; normalize afterwards on the small (N, 2Ed)
    # result (EUP approx reciprocal; XLU lane-reduce for counts -> free slots).
    scatter_oh = (col_ref[...] ==
                  lax.broadcasted_iota(jnp.int32, (N, E), 0)).astype(jnp.float32)  # (N, E)
    cnt = jnp.sum(scatter_oh, axis=1, keepdims=True)                               # (N, 1)
    inv = pl.reciprocal(jnp.maximum(cnt, 1.0), approx=True)                        # (N, 1)
    agg = jnp.dot(scatter_oh, msgs, preferred_element_type=jnp.float32) * inv      # (N, 2Ed)

    # ---- node-stage MLPs: [pos_mlp_2 | ang_mlp_2] fused, BN folded ----------
    z = (jnp.dot(node, v1n_ref[...], preferred_element_type=jnp.float32)
         + jnp.dot(agg, v1a_ref[...], preferred_element_type=jnp.float32)
         + c1_ref[...])                                                            # (N, 2H)
    z = jnp.maximum(z, 0.0)
    z = jnp.maximum(jnp.dot(z, v2_ref[...], preferred_element_type=jnp.float32)
                    + c2_ref[...], 0.0)                                            # (N, 2H)
    out = jnp.dot(z, v3_ref[...], preferred_element_type=jnp.float32) + c3_ref[...]  # (N, P+A)

    if residual:
        out = out + node
    out_ref[...] = out.astype(out_ref.dtype)


# --------------------------------------------------------------------------- #
# Host-side parameter fusion (BN folding, weight pre-splitting, branch fusion)
# --------------------------------------------------------------------------- #
def _fold_bn(mlp):
    """Fold eval-mode BatchNorm1d into the following Linear (exact)."""
    s = mlp["gamma"] / jnp.sqrt(mlp["rvar"] + BN_EPS)
    t = mlp["beta"] - mlp["rmean"] * s
    w2 = mlp["w2"] * s[:, None]
    b2 = mlp["b2"] + t @ mlp["w2"]
    return w2, b2


def _blockdiag(a, b):
    za = jnp.zeros((a.shape[0], b.shape[1]), a.dtype)
    zb = jnp.zeros((b.shape[0], a.shape[1]), b.dtype)
    return jnp.concatenate(
        [jnp.concatenate([a, za], axis=1), jnp.concatenate([zb, b], axis=1)], axis=0)


def fuse_params(params, pos_dim, ang_dim, edge_dim):
    P, A, Ed = pos_dim, ang_dim, edge_dim
    p1, a1 = params["pos_mlp_1"], params["ang_mlp_1"]
    p2, a2 = params["pos_mlp_2"], params["ang_mlp_2"]

    w2p, b2p = _fold_bn(p1)
    w2a, b2a = _fold_bn(a1)
    v2p, c2p = _fold_bn(p2)
    v2a, c2a = _fold_bn(a2)

    fused = {
        # edge stage (pos_mlp_1 | ang_mlp_1)
        "w1g": _blockdiag(p1["w1"][:P, :], a1["w1"][:A, :]),                    # (P+A, 2H)
        "w1e": jnp.concatenate([p1["w1"][P:, :], a1["w1"][A:, :]], axis=1),     # (Ed, 2H)
        "b1": jnp.concatenate([p1["b1"], a1["b1"]])[None, :],                   # (1, 2H)
        "w2": _blockdiag(w2p, w2a),                                             # (2H, 2H)
        "b2": jnp.concatenate([b2p, b2a])[None, :],
        "w3": _blockdiag(p1["w3"], a1["w3"]),                                   # (2H, 2Ed)
        "b3": jnp.concatenate([p1["b3"], a1["b3"]])[None, :],
        # node stage (pos_mlp_2 | ang_mlp_2)
        "v1n": _blockdiag(p2["w1"][:P, :], a2["w1"][:A, :]),                    # (P+A, 2H)
        "v1a": _blockdiag(p2["w1"][P:, :], a2["w1"][A:, :]),                    # (2Ed, 2H)
        "c1": jnp.concatenate([p2["b1"], a2["b1"]])[None, :],
        "v2": _blockdiag(v2p, v2a),
        "c2": jnp.concatenate([c2p, c2a])[None, :],
        "v3": _blockdiag(p2["w3"], a2["w3"]),                                   # (2H, P+A)
        "c3": jnp.concatenate([p2["b3"], a2["b3"]])[None, :],
    }
    return fused


# --------------------------------------------------------------------------- #
# Wrapper
# --------------------------------------------------------------------------- #
def node_block_forward(pos, ang, edge_index, edge_attr, params, residual=True):
    N, P = pos.shape
    A = ang.shape[1]
    E, Ed = edge_attr.shape

    fused = fuse_params(params, P, A, Ed)
    node_cat = jnp.concatenate([pos, ang], axis=1)                 # (N, P+A)
    row = edge_index[0].astype(jnp.int32).reshape(E, 1)            # (E, 1)  -> gather one-hot
    col = edge_index[1].astype(jnp.int32).reshape(1, E)            # (1, E)  -> scatter one-hot (no in-kernel transpose)

    operands = (
        node_cat, edge_attr, row, col,
        fused["w1g"], fused["w1e"], fused["b1"],
        fused["w2"], fused["b2"], fused["w3"], fused["b3"],
        fused["v1n"], fused["v1a"], fused["c1"],
        fused["v2"], fused["c2"], fused["v3"], fused["c3"],
    )

    # Tiny problem: single grid step, full-array blocks resident in VMEM.
    in_specs = [pl.BlockSpec(x.shape, lambda i: (0, 0)) for x in operands]
    out_spec = pl.BlockSpec((N, P + A), lambda i: (0, 0))

    out = pl.pallas_call(
        functools.partial(node_block_kernel, residual=residual),
        out_shape=jax.ShapeDtypeStruct((N, P + A), jnp.float32),
        grid_spec=pltpu.PrefetchScalarGridSpec(
            num_scalar_prefetch=0,
            grid=(1,),
            in_specs=in_specs,
            out_specs=out_spec,
        ),
        compiler_params=pltpu.CompilerParams(
            dimension_semantics=("arbitrary",),
        ),
    )(*operands)

    return out[:, :P], out[:, P:]


# --------------------------------------------------------------------------- #
# Parameter init (PyTorch-style: fresh Linear + eval-mode BatchNorm1d)
# --------------------------------------------------------------------------- #
def _init_mlp(key, in_dim, hidden_dim, out_dim):
    ks = jax.random.split(key, 6)

    def lin(kw, kb, fi, fo):
        bound = 1.0 / jnp.sqrt(fi)
        w = jax.random.uniform(kw, (fi, fo), jnp.float32, -bound, bound)
        b = jax.random.uniform(kb, (fo,), jnp.float32, -bound, bound)
        return w, b

    w1, b1 = lin(ks[0], ks[1], in_dim, hidden_dim)
    w2, b2 = lin(ks[2], ks[3], hidden_dim, hidden_dim)
    w3, b3 = lin(ks[4], ks[5], hidden_dim, out_dim)
    return {
        "w1": w1, "b1": b1, "w2": w2, "b2": b2, "w3": w3, "b3": b3,
        "gamma": jnp.ones((hidden_dim,), jnp.float32),
        "beta": jnp.zeros((hidden_dim,), jnp.float32),
        "rmean": jnp.zeros((hidden_dim,), jnp.float32),
        "rvar": jnp.ones((hidden_dim,), jnp.float32),
    }


def init_params(key, pos_dim, ang_dim, edge_dim, hidden_dim):
    ks = jax.random.split(key, 4)
    return {
        "pos_mlp_1": _init_mlp(ks[0], pos_dim + edge_dim, hidden_dim, edge_dim),
        "pos_mlp_2": _init_mlp(ks[1], pos_dim + edge_dim, hidden_dim, pos_dim),
        "ang_mlp_1": _init_mlp(ks[2], ang_dim + edge_dim, hidden_dim, edge_dim),
        "ang_mlp_2": _init_mlp(ks[3], ang_dim + edge_dim, hidden_dim, ang_dim),
    }


# --------------------------------------------------------------------------- #
# Pure-JAX reference (eval-mode BN) for a sanity check
# --------------------------------------------------------------------------- #
def _mlp_ref(x, p):
    h = jnp.maximum(x @ p["w1"] + p["b1"], 0.0)
    s = p["gamma"] / jnp.sqrt(p["rvar"] + BN_EPS)
    t = p["beta"] - p["rmean"] * s
    h = h * s + t
    h = jnp.maximum(h @ p["w2"] + p["b2"], 0.0)
    return h @ p["w3"] + p["b3"]


def node_block_ref(pos, ang, edge_index, edge_attr, params, residual):
    row, col = edge_index[0], edge_index[1]
    N = pos.shape[0]

    def branch(x, mlp1, mlp2):
        m = _mlp_ref(jnp.concatenate([x[row], edge_attr], axis=1), mlp1)
        sums = jax.ops.segment_sum(m, col, num_segments=N)
        cnt = jax.ops.segment_sum(jnp.ones((col.shape[0],), m.dtype), col, num_segments=N)
        mean = sums / jnp.maximum(cnt, 1.0)[:, None]
        return _mlp_ref(jnp.concatenate([x, mean], axis=1), mlp2)

    u = branch(pos, params["pos_mlp_1"], params["pos_mlp_2"])
    phi = branch(ang, params["ang_mlp_1"], params["ang_mlp_2"])
    if residual:
        u = pos + u
        phi = ang + phi
    return u, phi


# --------------------------------------------------------------------------- #
if __name__ == "__main__":
    POS_DIM, ANG_DIM, EDGE_DIM, HIDDEN_DIM = 3, 2, 8, 32
    N, E = 64, 256
    RESIDUAL = True

    root = jax.random.PRNGKey(0)
    kp, ka, ke, kr, kc, kw = jax.random.split(root, 6)

    pos = jax.random.normal(kp, (N, POS_DIM), jnp.float32)
    ang = jax.random.normal(ka, (N, ANG_DIM), jnp.float32)
    edge_attr = jax.random.normal(ke, (E, EDGE_DIM), jnp.float32)
    row = jax.random.randint(kr, (E,), 0, N, jnp.int32)
    col = jax.random.randint(kc, (E,), 0, N, jnp.int32)
    edge_index = jnp.stack([row, col])
    params = init_params(kw, POS_DIM, ANG_DIM, EDGE_DIM, HIDDEN_DIM)

    u, phi = node_block_forward(pos, ang, edge_index, edge_attr, params, residual=RESIDUAL)
    u, phi = jax.block_until_ready((u, phi))

    assert u.shape == (N, POS_DIM) and u.dtype == jnp.float32
    assert phi.shape == (N, ANG_DIM) and phi.dtype == jnp.float32
    assert bool(jnp.all(jnp.isfinite(u))) and bool(jnp.all(jnp.isfinite(phi)))

    u_ref, phi_ref = node_block_ref(pos, ang, edge_index, edge_attr, params, RESIDUAL)
    err = max(float(jnp.max(jnp.abs(u - u_ref))), float(jnp.max(jnp.abs(phi - phi_ref))))
    # Loose tolerance: default-precision MXU matmuls + approx reciprocal in the kernel.
    assert err < 1e-1, f"max abs diff vs reference: {err}"

    print("KERNEL_OK")
</pallas_src>

<mosaic_0001>
module attributes {stable_mosaic.version = 11 : i64} {
  func.func @node_block_kernel(%arg0: i32, %arg1: memref<64x5xf32, #tpu.memory_space<vmem>>, %arg2: memref<256x8xf32, #tpu.memory_space<vmem>>, %arg3: memref<256x1xi32, #tpu.memory_space<vmem>>, %arg4: memref<1x256xi32, #tpu.memory_space<vmem>>, %arg5: memref<5x64xf32, #tpu.memory_space<vmem>>, %arg6: memref<8x64xf32, #tpu.memory_space<vmem>>, %arg7: memref<1x64xf32, #tpu.memory_space<vmem>>, %arg8: memref<64x64xf32, #tpu.memory_space<vmem>>, %arg9: memref<1x64xf32, #tpu.memory_space<vmem>>, %arg10: memref<64x16xf32, #tpu.memory_space<vmem>>, %arg11: memref<1x16xf32, #tpu.memory_space<vmem>>, %arg12: memref<5x64xf32, #tpu.memory_space<vmem>>, %arg13: memref<16x64xf32, #tpu.memory_space<vmem>>, %arg14: memref<1x64xf32, #tpu.memory_space<vmem>>, %arg15: memref<64x64xf32, #tpu.memory_space<vmem>>, %arg16: memref<1x64xf32, #tpu.memory_space<vmem>>, %arg17: memref<64x5xf32, #tpu.memory_space<vmem>>, %arg18: memref<1x5xf32, #tpu.memory_space<vmem>>, %arg19: memref<64x5xf32, #tpu.memory_space<vmem>>) attributes {dimension_semantics = [#tpu.dimension_semantics<arbitrary>], iteration_bounds = array<i64: 1>, scalar_prefetch = 0 : i64, scratch_operands = 0 : i64, tpu.core_type = #tpu.core_type<tc>, window_params = [{pipeline_mode = #tpu.pipeline_mode<synchronous>, transform_indices = @transform_0, window_bounds = array<i64: 64, 5>}, {pipeline_mode = #tpu.pipeline_mode<synchronous>, transform_indices = @transform_1, window_bounds = array<i64: 256, 8>}, {pipeline_mode = #tpu.pipeline_mode<synchronous>, transform_indices = @transform_2, window_bounds = array<i64: 256, 1>}, {pipeline_mode = #tpu.pipeline_mode<synchronous>, transform_indices = @transform_3, window_bounds = array<i64: 1, 256>}, {pipeline_mode = #tpu.pipeline_mode<synchronous>, transform_indices = @transform_4, window_bounds = array<i64: 5, 64>}, {pipeline_mode = #tpu.pipeline_mode<synchronous>, transform_indices = @transform_5, window_bounds = array<i64: 8, 64>}, {pipeline_mode = #tpu.pipeline_mode<synchronous>, transform_indices = @transform_6, window_bounds = array<i64: 1, 64>}, {pipeline_mode = #tpu.pipeline_mode<synchronous>, transform_indices = @transform_7, window_bounds = array<i64: 64, 64>}, {pipeline_mode = #tpu.pipeline_mode<synchronous>, transform_indices = @transform_8, window_bounds = array<i64: 1, 64>}, {pipeline_mode = #tpu.pipeline_mode<synchronous>, transform_indices = @transform_9, window_bounds = array<i64: 64, 16>}, {pipeline_mode = #tpu.pipeline_mode<synchronous>, transform_indices = @transform_10, window_bounds = array<i64: 1, 16>}, {pipeline_mode = #tpu.pipeline_mode<synchronous>, transform_indices = @transform_11, window_bounds = array<i64: 5, 64>}, {pipeline_mode = #tpu.pipeline_mode<synchronous>, transform_indices = @transform_12, window_bounds = array<i64: 16, 64>}, {pipeline_mode = #tpu.pipeline_mode<synchronous>, transform_indices = @transform_13, window_bounds = array<i64: 1, 64>}, {pipeline_mode = #tpu.pipeline_mode<synchronous>, transform_indices = @transform_14, window_bounds = array<i64: 64, 64>}, {pipeline_mode = #tpu.pipeline_mode<synchronous>, transform_indices = @transform_15, window_bounds = array<i64: 1, 64>}, {pipeline_mode = #tpu.pipeline_mode<synchronous>, transform_indices = @transform_16, window_bounds = array<i64: 64, 5>}, {pipeline_mode = #tpu.pipeline_mode<synchronous>, transform_indices = @transform_17, window_bounds = array<i64: 1, 5>}, {pipeline_mode = #tpu.pipeline_mode<synchronous>, transform_indices = @transform_18, window_bounds = array<i64: 64, 5>}]} {
    %c0 = arith.constant 0 : index
    %c0_0 = arith.constant 0 : index
    %0 = vector.load %arg1[%c0, %c0_0] : memref<64x5xf32, #tpu.memory_space<vmem>>, vector<64x5xf32>
    %c0_1 = arith.constant 0 : index
    %c0_2 = arith.constant 0 : index
    %1 = vector.load %arg2[%c0_1, %c0_2] : memref<256x8xf32, #tpu.memory_space<vmem>>, vector<256x8xf32>
    %c0_3 = arith.constant 0 : index
    %c0_4 = arith.constant 0 : index
    %2 = vector.load %arg3[%c0_3, %c0_4] : memref<256x1xi32, #tpu.memory_space<vmem>>, vector<256x1xi32>
    %3 = tpu.iota {dimensions = array<i32: 1>} : vector<256x64xi32>
    %4 = vector.broadcast %2 : vector<256x1xi32> to vector<256x64xi32>
    %5 = arith.cmpi eq, %4, %3 : vector<256x64xi32>
    %6 = arith.extui %5 : vector<256x64xi1> to vector<256x64xi32>
    %7 = arith.sitofp %6 : vector<256x64xi32> to vector<256x64xf32>
    %cst = arith.constant dense<0.000000e+00> : vector<256x5xf32>
    %8 = tpu.matmul %7, %0, %cst {dimension_numbers = #tpu.dot_dimension_numbers<[1], [0], [0], [1], [0, 0, 1, 1], [], []>} : vector<256x64xf32>, vector<64x5xf32>, vector<256x5xf32> -> vector<256x5xf32>
    %c0_5 = arith.constant 0 : index
    %c0_6 = arith.constant 0 : index
    %9 = vector.load %arg5[%c0_5, %c0_6] : memref<5x64xf32, #tpu.memory_space<vmem>>, vector<5x64xf32>
    %cst_7 = arith.constant dense<0.000000e+00> : vector<256x64xf32>
    %10 = tpu.matmul %8, %9, %cst_7 {dimension_numbers = #tpu.dot_dimension_numbers<[1], [0], [0], [1], [0, 0, 1, 1], [], []>} : vector<256x5xf32>, vector<5x64xf32>, vector<256x64xf32> -> vector<256x64xf32>
    %c0_8 = arith.constant 0 : index
    %c0_9 = arith.constant 0 : index
    %11 = vector.load %arg6[%c0_8, %c0_9] : memref<8x64xf32, #tpu.memory_space<vmem>>, vector<8x64xf32>
    %cst_10 = arith.constant dense<0.000000e+00> : vector<256x64xf32>
    %12 = tpu.matmul %1, %11, %cst_10 {dimension_numbers = #tpu.dot_dimension_numbers<[1], [0], [0], [1], [0, 0, 1, 1], [], []>} : vector<256x8xf32>, vector<8x64xf32>, vector<256x64xf32> -> vector<256x64xf32>
    %13 = arith.addf %10, %12 : vector<256x64xf32>
    %c0_11 = arith.constant 0 : index
    %c0_12 = arith.constant 0 : index
    %14 = vector.load %arg7[%c0_11, %c0_12] : memref<1x64xf32, #tpu.memory_space<vmem>>, vector<1x64xf32>
    %15 = vector.broadcast %14 : vector<1x64xf32> to vector<256x64xf32>
    %16 = arith.addf %13, %15 : vector<256x64xf32>
    %cst_13 = arith.constant 0.000000e+00 : f32
    %17 = vector.broadcast %cst_13 : f32 to vector<256x64xf32>
    %18 = arith.maximumf %16, %17 : vector<256x64xf32>
    %c0_14 = arith.constant 0 : index
    %c0_15 = arith.constant 0 : index
    %19 = vector.load %arg8[%c0_14, %c0_15] : memref<64x64xf32, #tpu.memory_space<vmem>>, vector<64x64xf32>
    %cst_16 = arith.constant dense<0.000000e+00> : vector<256x64xf32>
    %20 = tpu.matmul %18, %19, %cst_16 {dimension_numbers = #tpu.dot_dimension_numbers<[1], [0], [0], [1], [0, 0, 1, 1], [], []>} : vector<256x64xf32>, vector<64x64xf32>, vector<256x64xf32> -> vector<256x64xf32>
    %c0_17 = arith.constant 0 : index
    %c0_18 = arith.constant 0 : index
    %21 = vector.load %arg9[%c0_17, %c0_18] : memref<1x64xf32, #tpu.memory_space<vmem>>, vector<1x64xf32>
    %22 = vector.broadcast %21 : vector<1x64xf32> to vector<256x64xf32>
    %23 = arith.addf %20, %22 : vector<256x64xf32>
    %cst_19 = arith.constant 0.000000e+00 : f32
    %24 = vector.broadcast %cst_19 : f32 to vector<256x64xf32>
    %25 = arith.maximumf %23, %24 : vector<256x64xf32>
    %c0_20 = arith.constant 0 : index
    %c0_21 = arith.constant 0 : index
    %26 = vector.load %arg10[%c0_20, %c0_21] : memref<64x16xf32, #tpu.memory_space<vmem>>, vector<64x16xf32>
    %cst_22 = arith.constant dense<0.000000e+00> : vector<256x16xf32>
    %27 = tpu.matmul %25, %26, %cst_22 {dimension_numbers = #tpu.dot_dimension_numbers<[1], [0], [0], [1], [0, 0, 1, 1], [], []>} : vector<256x64xf32>, vector<64x16xf32>, vector<256x16xf32> -> vector<256x16xf32>
    %c0_23 = arith.constant 0 : index
    %c0_24 = arith.constant 0 : index
    %28 = vector.load %arg11[%c0_23, %c0_24] : memref<1x16xf32, #tpu.memory_space<vmem>>, vector<1x16xf32>
    %29 = vector.broadcast %28 : vector<1x16xf32> to vector<256x16xf32>
    %30 = arith.addf %27, %29 : vector<256x16xf32>
    %c0_25 = arith.constant 0 : index
    %c0_26 = arith.constant 0 : index
    %31 = vector.load %arg4[%c0_25, %c0_26] : memref<1x256xi32, #tpu.memory_space<vmem>>, vector<1x256xi32>
    %32 = tpu.iota {dimensions = array<i32: 0>} : vector<64x256xi32>
    %33 = vector.broadcast %31 : vector<1x256xi32> to vector<64x256xi32>
    %34 = arith.cmpi eq, %33, %32 : vector<64x256xi32>
    %35 = arith.extui %34 : vector<64x256xi1> to vector<64x256xi32>
    %36 = arith.sitofp %35 : vector<64x256xi32> to vector<64x256xf32>
    %cst_27 = arith.constant dense<0.000000e+00> : vector<64xf32>
    %37 = vector.multi_reduction <add>, %36, %cst_27 [1] : vector<64x256xf32> to vector<64xf32>
    %38 = vector.shape_cast %37 : vector<64xf32> to vector<64x1xf32>
    %cst_28 = arith.constant 1.000000e+00 : f32
    %39 = vector.broadcast %cst_28 : f32 to vector<64x1xf32>
    %40 = arith.maximumf %38, %39 : vector<64x1xf32>
    %41 = tpu.reciprocal %40 {approx = true} : vector<64x1xf32> -> vector<64x1xf32>
    %cst_29 = arith.constant dense<0.000000e+00> : vector<64x16xf32>
    %42 = tpu.matmul %36, %30, %cst_29 {dimension_numbers = #tpu.dot_dimension_numbers<[1], [0], [0], [1], [0, 0, 1, 1], [], []>} : vector<64x256xf32>, vector<256x16xf32>, vector<64x16xf32> -> vector<64x16xf32>
    %43 = vector.broadcast %41 : vector<64x1xf32> to vector<64x16xf32>
    %44 = arith.mulf %42, %43 : vector<64x16xf32>
    %c0_30 = arith.constant 0 : index
    %c0_31 = arith.constant 0 : index
    %45 = vector.load %arg12[%c0_30, %c0_31] : memref<5x64xf32, #tpu.memory_space<vmem>>, vector<5x64xf32>
    %cst_32 = arith.constant dense<0.000000e+00> : vector<64x64xf32>
    %46 = tpu.matmul %0, %45, %cst_32 {dimension_numbers = #tpu.dot_dimension_numbers<[1], [0], [0], [1], [0, 0, 1, 1], [], []>} : vector<64x5xf32>, vector<5x64xf32>, vector<64x64xf32> -> vector<64x64xf32>
    %c0_33 = arith.constant 0 : index
    %c0_34 = arith.constant 0 : index
    %47 = vector.load %arg13[%c0_33, %c0_34] : memref<16x64xf32, #tpu.memory_space<vmem>>, vector<16x64xf32>
    %cst_35 = arith.constant dense<0.000000e+00> : vector<64x64xf32>
    %48 = tpu.matmul %44, %47, %cst_35 {dimension_numbers = #tpu.dot_dimension_numbers<[1], [0], [0], [1], [0, 0, 1, 1], [], []>} : vector<64x16xf32>, vector<16x64xf32>, vector<64x64xf32> -> vector<64x64xf32>
    %49 = arith.addf %46, %48 : vector<64x64xf32>
    %c0_36 = arith.constant 0 : index
    %c0_37 = arith.constant 0 : index
    %50 = vector.load %arg14[%c0_36, %c0_37] : memref<1x64xf32, #tpu.memory_space<vmem>>, vector<1x64xf32>
    %51 = vector.broadcast %50 : vector<1x64xf32> to vector<64x64xf32>
    %52 = arith.addf %49, %51 : vector<64x64xf32>
    %cst_38 = arith.constant 0.000000e+00 : f32
    %53 = vector.broadcast %cst_38 : f32 to vector<64x64xf32>
    %54 = arith.maximumf %52, %53 : vector<64x64xf32>
    %c0_39 = arith.constant 0 : index
    %c0_40 = arith.constant 0 : index
    %55 = vector.load %arg15[%c0_39, %c0_40] : memref<64x64xf32, #tpu.memory_space<vmem>>, vector<64x64xf32>
    %cst_41 = arith.constant dense<0.000000e+00> : vector<64x64xf32>
    %56 = tpu.matmul %54, %55, %cst_41 {dimension_numbers = #tpu.dot_dimension_numbers<[1], [0], [0], [1], [0, 0, 1, 1], [], []>} : vector<64x64xf32>, vector<64x64xf32>, vector<64x64xf32> -> vector<64x64xf32>
    %c0_42 = arith.constant 0 : index
    %c0_43 = arith.constant 0 : index
    %57 = vector.load %arg16[%c0_42, %c0_43] : memref<1x64xf32, #tpu.memory_space<vmem>>, vector<1x64xf32>
    %58 = vector.broadcast %57 : vector<1x64xf32> to vector<64x64xf32>
    %59 = arith.addf %56, %58 : vector<64x64xf32>
    %cst_44 = arith.constant 0.000000e+00 : f32
    %60 = vector.broadcast %cst_44 : f32 to vector<64x64xf32>
    %61 = arith.maximumf %59, %60 : vector<64x64xf32>
    %c0_45 = arith.constant 0 : index
    %c0_46 = arith.constant 0 : index
    %62 = vector.load %arg17[%c0_45, %c0_46] : memref<64x5xf32, #tpu.memory_space<vmem>>, vector<64x5xf32>
    %cst_47 = arith.constant dense<0.000000e+00> : vector<64x5xf32>
    %63 = tpu.matmul %61, %62, %cst_47 {dimension_numbers = #tpu.dot_dimension_numbers<[1], [0], [0], [1], [0, 0, 1, 1], [], []>} : vector<64x64xf32>, vector<64x5xf32>, vector<64x5xf32> -> vector<64x5xf32>
    %c0_48 = arith.constant 0 : index
    %c0_49 = arith.constant 0 : index
    %64 = vector.load %arg18[%c0_48, %c0_49] : memref<1x5xf32, #tpu.memory_space<vmem>>, vector<1x5xf32>
    %65 = vector.broadcast %64 : vector<1x5xf32> to vector<64x5xf32>
    %66 = arith.addf %63, %65 : vector<64x5xf32>
    %67 = arith.addf %66, %0 : vector<64x5xf32>
    %c0_50 = arith.constant 0 : index
    %c0_51 = arith.constant 0 : index
    %68 = vector.load %arg19[%c0_50, %c0_51] : memref<64x5xf32, #tpu.memory_space<vmem>>, vector<64x5xf32>
    tpu.vector_store %arg19[%c0_50, %c0_51], %67 {strides = array<i32>} : memref<64x5xf32, #tpu.memory_space<vmem>>, vector<64x5xf32>,
    return
  }
  func.func @transform_0(%arg0: i32) -> (i32, i32) {
    %c0_i32 = arith.constant 0 : i32
    %c0_i32_0 = arith.constant 0 : i32
    %c0_i32_1 = arith.constant 0 : i32
    return %c0_i32, %c0_i32_0 : i32, i32
  }
  func.func @transform_1(%arg0: i32) -> (i32, i32) {
    %c0_i32 = arith.constant 0 : i32
    %c0_i32_0 = arith.constant 0 : i32
    %c0_i32_1 = arith.constant 0 : i32
    return %c0_i32, %c0_i32_0 : i32, i32
  }
  func.func @transform_2(%arg0: i32) -> (i32, i32) {
    %c0_i32 = arith.constant 0 : i32
    %c0_i32_0 = arith.constant 0 : i32
    %c0_i32_1 = arith.constant 0 : i32
    return %c0_i32, %c0_i32_0 : i32, i32
  }
  func.func @transform_3(%arg0: i32) -> (i32, i32) {
    %c0_i32 = arith.constant 0 : i32
    %c0_i32_0 = arith.constant 0 : i32
    %c0_i32_1 = arith.constant 0 : i32
    return %c0_i32, %c0_i32_0 : i32, i32
  }
  func.func @transform_4(%arg0: i32) -> (i32, i32) {
    %c0_i32 = arith.constant 0 : i32
    %c0_i32_0 = arith.constant 0 : i32
    %c0_i32_1 = arith.constant 0 : i32
    return %c0_i32, %c0_i32_0 : i32, i32
  }
  func.func @transform_5(%arg0: i32) -> (i32, i32) {
    %c0_i32 = arith.constant 0 : i32
    %c0_i32_0 = arith.constant 0 : i32
    %c0_i32_1 = arith.constant 0 : i32
    return %c0_i32, %c0_i32_0 : i32, i32
  }
  func.func @transform_6(%arg0: i32) -> (i32, i32) {
    %c0_i32 = arith.constant 0 : i32
    %c0_i32_0 = arith.constant 0 : i32
    %c0_i32_1 = arith.constant 0 : i32
    return %c0_i32, %c0_i32_0 : i32, i32
  }
  func.func @transform_7(%arg0: i32) -> (i32, i32) {
    %c0_i32 = arith.constant 0 : i32
    %c0_i32_0 = arith.constant 0 : i32
    %c0_i32_1 = arith.constant 0 : i32
    return %c0_i32, %c0_i32_0 : i32, i32
  }
  func.func @transform_8(%arg0: i32) -> (i32, i32) {
    %c0_i32 = arith.constant 0 : i32
    %c0_i32_0 = arith.constant 0 : i32
    %c0_i32_1 = arith.constant 0 : i32
    return %c0_i32, %c0_i32_0 : i32, i32
  }
  func.func @transform_9(%arg0: i32) -> (i32, i32) {
    %c0_i32 = arith.constant 0 : i32
    %c0_i32_0 = arith.constant 0 : i32
    %c0_i32_1 = arith.constant 0 : i32
    return %c0_i32, %c0_i32_0 : i32, i32
  }
  func.func @transform_10(%arg0: i32) -> (i32, i32) {
    %c0_i32 = arith.constant 0 : i32
    %c0_i32_0 = arith.constant 0 : i32
    %c0_i32_1 = arith.constant 0 : i32
    return %c0_i32, %c0_i32_0 : i32, i32
  }
  func.func @transform_11(%arg0: i32) -> (i32, i32) {
    %c0_i32 = arith.constant 0 : i32
    %c0_i32_0 = arith.constant 0 : i32
    %c0_i32_1 = arith.constant 0 : i32
    return %c0_i32, %c0_i32_0 : i32, i32
  }
  func.func @transform_12(%arg0: i32) -> (i32, i32) {
    %c0_i32 = arith.constant 0 : i32
    %c0_i32_0 = arith.constant 0 : i32
    %c0_i32_1 = arith.constant 0 : i32
    return %c0_i32, %c0_i32_0 : i32, i32
  }
  func.func @transform_13(%arg0: i32) -> (i32, i32) {
    %c0_i32 = arith.constant 0 : i32
    %c0_i32_0 = arith.constant 0 : i32
    %c0_i32_1 = arith.constant 0 : i32
    return %c0_i32, %c0_i32_0 : i32, i32
  }
  func.func @transform_14(%arg0: i32) -> (i32, i32) {
    %c0_i32 = arith.constant 0 : i32
    %c0_i32_0 = arith.constant 0 : i32
    %c0_i32_1 = arith.constant 0 : i32
    return %c0_i32, %c0_i32_0 : i32, i32
  }
  func.func @transform_15(%arg0: i32) -> (i32, i32) {
    %c0_i32 = arith.constant 0 : i32
    %c0_i32_0 = arith.constant 0 : i32
    %c0_i32_1 = arith.constant 0 : i32
    return %c0_i32, %c0_i32_0 : i32, i32
  }
  func.func @transform_16(%arg0: i32) -> (i32, i32) {
    %c0_i32 = arith.constant 0 : i32
    %c0_i32_0 = arith.constant 0 : i32
    %c0_i32_1 = arith.constant 0 : i32
    return %c0_i32, %c0_i32_0 : i32, i32
  }
  func.func @transform_17(%arg0: i32) -> (i32, i32) {
    %c0_i32 = arith.constant 0 : i32
    %c0_i32_0 = arith.constant 0 : i32
    %c0_i32_1 = arith.constant 0 : i32
    return %c0_i32, %c0_i32_0 : i32, i32
  }
  func.func @transform_18(%arg0: i32) -> (i32, i32) {
    %c0_i32 = arith.constant 0 : i32
    %c0_i32_0 = arith.constant 0 : i32
    %c0_i32_1 = arith.constant 0 : i32
    return %c0_i32, %c0_i32_0 : i32, i32
  }
}

</mosaic_0001>

<bundles_post_ra>
// kernel: tpu_custom_call.1
= control target key start
LH: loop header
LB: loop body
LE: loop exit
PB: predicated region body
PF: predicated region fallthrough
CT: control target
= control target key end

     0   :  { %v3875_v0 = vmov 0   ;;  %vm649_vm0 = vcmask 64512   ;;  %vm1068_vm1 = vcmask 1044480   ;;  %vm5093_vm2 = vcmask 523264   ;;  %s5072_s2 = inlined_call_operand.vmem [shape: s32[256,1], index: 2, kind: input, shape index: {}]   ;;  %s5073_s0 = inlined_call_operand.vmem [shape: f32[64,5], index: 0, kind: input, shape index: {}]   ;;  %s5074_s5 = inlined_call_operand.vmem [shape: f32[8,64], index: 5, kind: input, shape index: {}]   ;;  %s5075_s1 = inlined_call_operand.vmem [shape: f32[256,8], index: 1, kind: input, shape index: {}]   ;;  %s5076_s4 = inlined_call_operand.vmem [shape: f32[5,64], index: 4, kind: input, shape index: {}]   ;;  %s5077_s7 = inlined_call_operand.vmem [shape: f32[64,64], index: 7, kind: input, shape index: {}]   ;;  %s5078_s9 = inlined_call_operand.vmem [shape: f32[64,16], index: 9, kind: input, shape index: {}]   ;;  %s5079_s6 = inlined_call_operand.vmem [shape: f32[1,64], index: 6, kind: input, shape index: {}]   ;;  %s5080_s8 = inlined_call_operand.vmem [shape: f32[1,64], index: 8, kind: input, shape index: {}]   ;;  %s5081_s3 = inlined_call_operand.vmem [shape: s32[1,256], index: 3, kind: input, shape index: {}]   ;;  %s5082_s10 = inlined_call_operand.vmem [shape: f32[1,16], index: 10, kind: input, shape index: {}]   ;;  %s5083_s12 = inlined_call_operand.vmem [shape: f32[16,64], index: 12, kind: input, shape index: {}]   ;;  %s5084_s11 = inlined_call_operand.vmem [shape: f32[5,64], index: 11, kind: input, shape index: {}]   ;;  %s5085_s14 = inlined_call_operand.vmem [shape: f32[64,64], index: 14, kind: input, shape index: {}]   ;;  %s5086_s16 = inlined_call_operand.vmem [shape: f32[64,5], index: 16, kind: input, shape index: {}]   ;;  %s5087_s13 = inlined_call_operand.vmem [shape: f32[1,64], index: 13, kind: input, shape index: {}]   ;;  %s5088_s15 = inlined_call_operand.vmem [shape: f32[1,64], index: 15, kind: input, shape index: {}]   ;;  %s5089_s17 = inlined_call_operand.vmem [shape: f32[1,5], index: 17, kind: input, shape index: {}]   ;;  %s5090_s18 = inlined_call_operand.vmem [shape: f32[64,5], index: 18, kind: output, shape index: {}]  }
   0x1   :  { %5095 = sst [smem:[#allocation2_spill]] %s5072_s2  ;;  %3850 = vset.pattern.permute.xlu1 %v3875_v0  ;;  %3849 = vset.pattern.permute.xlu0 %v3875_v0  ;;  %v67_v42 = vld [vmem:[%s5075_s1] sm:$0xff]  ;;  %v68_v43 = vld [vmem:[%s5075_s1 + $0x8] sm:$0xff]  ;;  %v69_v44 = vld [vmem:[%s5075_s1 + $0x10] sm:$0xff] }
   0x2   :  { %5096 = sst [smem:[#allocation3_spill]] %s5073_s0  ;;  %3518 = vmatprep.mubr.msk.f32.mxu1 %vm649_vm0, %v67_v42  ;;  %v70_v45 = vld [vmem:[%s5075_s1 + $0x18] sm:$0xff]  ;;  %v71_v46 = vld [vmem:[%s5075_s1 + $0x20] sm:$0xff]  ;;  %v72_v48 = vld [vmem:[%s5075_s1 + $0x28] sm:$0xff] }
   0x3   :  { %5097 = sst [smem:[#allocation4_spill]] %s5074_s5  ;;  %v647_v47 = vld [vmem:[%s5076_s4] sm:$0x1f]  ;;  %v73_v49 = vld [vmem:[%s5075_s1 + $0x30] sm:$0xff]  ;;  %v74_v50 = vld [vmem:[%s5075_s1 + $0x38] sm:$0xff] }
   0x4   :  { %s5098_s29 = sld [smem:[#allocation2_spill]]  ;;  %v75_v51 = vld [vmem:[%s5075_s1 + $0x40] sm:$0xff]  ;;  %v76_v52 = vld [vmem:[%s5075_s1 + $0x48] sm:$0xff]  ;;  %v77_v53 = vld [vmem:[%s5075_s1 + $0x50] sm:$0xff] }
   0x5   :  { %s5099_s19 = sld [smem:[#allocation3_spill]]  ;;  %v78_v54 = vld [vmem:[%s5075_s1 + $0x58] sm:$0xff]  ;;  %v79_v55 = vld [vmem:[%s5075_s1 + $0x60] sm:$0xff]  ;;  %v80_v56 = vld [vmem:[%s5075_s1 + $0x68] sm:$0xff] }
   0x6   :  { %s5100_s2 = sld [smem:[#allocation4_spill]]  ;;  %v81_v57 = vld [vmem:[%s5075_s1 + $0x70] sm:$0xff]  ;;  %v82_v58 = vld [vmem:[%s5075_s1 + $0x78] sm:$0xff]  ;;  %v83_v59 = vld [vmem:[%s5075_s1 + $0x80] sm:$0xff] }
   0x7   :  { %v84_v60 = vld [vmem:[%s5075_s1 + $0x88] sm:$0xff]  ;;  %v85_v61 = vld [vmem:[%s5075_s1 + $0x90] sm:$0xff]  ;;  %v86_v62 = vld [vmem:[%s5075_s1 + $0x98] sm:$0xff] }
   0x8   :  { %v87_v63 = vld [vmem:[%s5075_s1 + $0xa0] sm:$0xff]  ;;  %v88_v0 = vld [vmem:[%s5075_s1 + $0xa8] sm:$0xff] }
   0xa   :  { %v101_v1 = vld [vmem:[%s5098_s29 + $0x10] sm:$0xff]  ;;  %v99_v2 = vld [vmem:[%s5098_s29] sm:$0xff]  ;;  %v102_v3 = vld [vmem:[%s5098_s29 + $0x18] sm:$0xff] }
   0xb   :  { %140 = vperm.xlu1 %3850, %v101_v1   ;;  %134 = vperm.xlu0 %3849, %v99_v2   ;;  %v100_v4 = vld [vmem:[%s5098_s29 + $0x8] sm:$0xff]  ;;  %v103_v6 = vld [vmem:[%s5098_s29 + $0x20] sm:$0xff]  ;;  %v106_v7 = vld [vmem:[%s5098_s29 + $0x38] sm:$0xff] }
   0xc   :  { %v104_v5 = vld [vmem:[%s5098_s29 + $0x28] sm:$0xff]  ;;  %v105_v8 = vld [vmem:[%s5098_s29 + $0x30] sm:$0xff]  ;;  %v66_v9 = vld [vmem:[%s5099_s19 + $0x38] sm:$0xff] }
   0xd   :  { %3452 = vmatprep.subr.mxu0 %v66_v9  ;;  %v65_v10 = vld [vmem:[%s5099_s19 + $0x30] sm:$0xff]  ;;  %v64_v11 = vld [vmem:[%s5099_s19 + $0x28] sm:$0xff]  ;;  %v107_v13 = vld [vmem:[%s5098_s29 + $0x40] sm:$0xff] }
   0xe   :  { %3453 = vmatpush3.msra.mxu0 %v66_v9  ;;  %v108_v12 = vld [vmem:[%s5098_s29 + $0x48] sm:$0xff]  ;;  %v63_v14 = vld [vmem:[%s5099_s19 + $0x20] sm:$0xff]  ;;  %v110_v15 = vld [vmem:[%s5098_s29 + $0x58] sm:$0xff] }
   0xf   :  { %143 = vperm.xlu1 %3850, %v102_v3   ;;  %137 = vperm.xlu0 %3849, %v100_v4   ;;  %v109_v16 = vld [vmem:[%s5098_s29 + $0x50] sm:$0xff]  ;;  %v62_v17 = vld [vmem:[%s5099_s19 + $0x18] sm:$0xff]  ;;  %v112_v19 = vld [vmem:[%s5098_s29 + $0x68] sm:$0xff] }
  0x10   :  { %3454 = vmatprep.subr.mxu0 %v65_v10  ;;  %v61_v18 = vld [vmem:[%s5099_s19 + $0x10] sm:$0xff]  ;;  %v111_v20 = vld [vmem:[%s5098_s29 + $0x60] sm:$0xff]  ;;  %v60_v21 = vld [vmem:[%s5099_s19 + $0x8] sm:$0xff] }
  0x11   :  { %3455 = vmatpush3.msra.mxu0 %v65_v10  ;;  %v114_v22 = vld [vmem:[%s5098_s29 + $0x78] sm:$0xff]  ;;  %v113_v23 = vld [vmem:[%s5098_s29 + $0x70] sm:$0xff]  ;;  %v59_v24 = vld [vmem:[%s5099_s19] sm:$0xff] }
  0x12   :  { %3456 = vmatprep.subr.mxu0 %v64_v11  ;;  %v116_v25 = vld [vmem:[%s5098_s29 + $0x88] sm:$0xff]  ;;  %v115_v26 = vld [vmem:[%s5098_s29 + $0x80] sm:$0xff]  ;;  %v118_v27 = vld [vmem:[%s5098_s29 + $0x98] sm:$0xff] }
  0x13   :  { %149 = vperm.xlu1 %3850, %v104_v5   ;;  %146 = vperm.xlu0 %3849, %v103_v6   ;;  %v117_v28 = vld [vmem:[%s5098_s29 + $0x90] sm:$0xff]  ;;  %v120_v29 = vld [vmem:[%s5098_s29 + $0xa8] sm:$0xff]  ;;  %v119_v30 = vld [vmem:[%s5098_s29 + $0xa0] sm:$0xff] }
  0x14   :  { %3457 = vmatpush3.msra.mxu0 %v64_v11  ;;  %v122_v31 = vld [vmem:[%s5098_s29 + $0xb8] sm:$0xff]  ;;  %v121_v32 = vld [vmem:[%s5098_s29 + $0xb0] sm:$0xff]  ;;  %v124_v33 = vld [vmem:[%s5098_s29 + $0xc8] sm:$0xff] }
  0x15   :  { %3458 = vmatprep.subr.mxu0 %v63_v14  ;;  %v123_v34 = vld [vmem:[%s5098_s29 + $0xc0] sm:$0xff]  ;;  %v126_v35 = vld [vmem:[%s5098_s29 + $0xd8] sm:$0xff]  ;;  %v125_v36 = vld [vmem:[%s5098_s29 + $0xd0] sm:$0xff] }
  0x16   :  { %3459 = vmatpush3.msra.mxu0 %v63_v14  ;;  %v128_v37 = vld [vmem:[%s5098_s29 + $0xe8] sm:$0xff]  ;;  %v127_v38 = vld [vmem:[%s5098_s29 + $0xe0] sm:$0xff]  ;;  %v130_v39 = vld [vmem:[%s5098_s29 + $0xf8] sm:$0xff] }
  0x17   :  { %155 = vperm.xlu1 %3850, %v106_v7   ;;  %152 = vperm.xlu0 %3849, %v105_v8   ;;  %v129_v40 = vld [vmem:[%s5098_s29 + $0xf0] sm:$0xff]  ;;  %v648_v41 = vld [vmem:[%s5100_s2] sm:$0xff]  ;;  %v90_v2 = vld [vmem:[%s5075_s1 + $0xb8] sm:$0xff]  ;;  %v131_v7 = vlaneseq }
  0x18   :  { %3460 = vmatprep.subr.mxu0 %v62_v17  ;;  %3516 = vmatprep.subr.mxu1 %v648_v41  ;;  %v89_v1 = vld [vmem:[%s5075_s1 + $0xb0] sm:$0xff]  ;;  %v91_v3 = vld [vmem:[%s5075_s1 + $0xc0] sm:$0xff]  ;;  %v92_v4 = vld [vmem:[%s5075_s1 + $0xc8] sm:$0xff] }
  0x19   :  { %3461 = vmatpush3.msra.mxu0 %v62_v17  ;;  %3517 = vmatpush3.msra.mxu1 %v648_v41  ;;  %v93_v5 = vld [vmem:[%s5075_s1 + $0xd0] sm:$0xff]  ;;  %v94_v6 = vld [vmem:[%s5075_s1 + $0xd8] sm:$0xff]  ;;  %v95_v8 = vld [vmem:[%s5075_s1 + $0xe0] sm:$0xff]  ;;  %v4221_v10 = vand.u32 127, %v131_v7 }
  0x1a   :  { %3462 = vmatprep.subr.mxu0 %v61_v18  ;;  %3519 = vmatmul.mubr.msk.f32.vlgmr.msra.gmra.mxu1 %vm649_vm0, %v68_v43  ;;  %v96_v9 = vld [vmem:[%s5075_s1 + $0xe8] sm:$0xff]  ;;  %v97_v11 = vld [vmem:[%s5075_s1 + $0xf0] sm:$0xff]  ;;  %v98_v14 = vld [vmem:[%s5075_s1 + $0xf8] sm:$0xff] }
  0x1b   :  { %161 = vperm.xlu1 %3850, %v108_v12   ;;  %158 = vperm.xlu0 %3849, %v107_v13  }
  0x1c   :  { %3463 = vmatpush3.msra.mxu0 %v61_v18  ;;  %3521 = vmatprep.mubr.msk.f32.mxu1 %vm649_vm0, %v69_v44 }
  0x1d   :  { %3464 = vmatprep.subr.mxu0 %v60_v21  ;;  %3566 = vmatprep.subr.msk.mxu1 %vm1068_vm1, %v647_v47 }
  0x1e   :  { %3465 = vmatpush3.msra.mxu0 %v60_v21  ;;  %3522 = vmatmul.mubr.msk.f32.gmra.mxu1 %vm649_vm0, %v70_v45 }
  0x1f   :  { %167 = vperm.xlu1 %3850, %v110_v15   ;;  %164 = vperm.xlu0 %3849, %v109_v16   ;;  %v3876_v15 = vmov 0.0  }
  0x20   :  { %3466 = vmatprep.subr.mxu0 %v59_v24  ;;  %3524 = vmatprep.mubr.msk.f32.mxu1 %vm649_vm0, %v71_v46 }
  0x21   :  { %3467 = vmatpush3.msra.mxu0 %v59_v24  ;;  %3567 = vmatpush3.msk.msra.mxu1 %vm1068_vm1, %v647_v47 }
  0x22   :  { %3525 = vmatmul.mubr.msk.f32.gmra.mxu1 %vm649_vm0, %v72_v48 }
  0x23   :  { %173 = vperm.xlu1 %3850, %v112_v19   ;;  %170 = vperm.xlu0 %3849, %v111_v20  }
  0x24   :  { %3527 = vmatprep.mubr.msk.f32.mxu1 %vm649_vm0, %v73_v49 }
  0x26   :  { %3528 = vmatmul.mubr.msk.f32.gmra.mxu1 %vm649_vm0, %v74_v50 }
  0x27   :  { %179 = vperm.xlu1 %3850, %v114_v22   ;;  %176 = vperm.xlu0 %3849, %v113_v23  }
  0x28   :  { %3530 = vmatprep.mubr.msk.f32.mxu1 %vm649_vm0, %v75_v51 }
  0x2a   :  { %3531 = vmatmul.mubr.msk.f32.gmra.mxu1 %vm649_vm0, %v76_v52 }
  0x2b   :  { %185 = vperm.xlu1 %3850, %v116_v25   ;;  %182 = vperm.xlu0 %3849, %v115_v26  }
  0x2c   :  { %3533 = vmatprep.mubr.msk.f32.mxu1 %vm649_vm0, %v77_v53 }
  0x2e   :  { %3534 = vmatmul.mubr.msk.f32.gmra.mxu1 %vm649_vm0, %v78_v54 }
  0x2f   :  { %191 = vperm.xlu1 %3850, %v118_v27   ;;  %188 = vperm.xlu0 %3849, %v117_v28  }
  0x30   :  { %3536 = vmatprep.mubr.msk.f32.mxu1 %vm649_vm0, %v79_v55 }
  0x32   :  { %3537 = vmatmul.mubr.msk.f32.gmra.mxu1 %vm649_vm0, %v80_v56 }
  0x33   :  { %197 = vperm.xlu1 %3850, %v120_v29   ;;  %194 = vperm.xlu0 %3849, %v119_v30  }
  0x34   :  { %3539 = vmatprep.mubr.msk.f32.mxu1 %vm649_vm0, %v81_v57 }
  0x36   :  { %3540 = vmatmul.mubr.msk.f32.gmra.mxu1 %vm649_vm0, %v82_v58 }
  0x37   :  { %203 = vperm.xlu1 %3850, %v122_v31   ;;  %200 = vperm.xlu0 %3849, %v121_v32  }
  0x38   :  { %3542 = vmatprep.mubr.msk.f32.mxu1 %vm649_vm0, %v83_v59 }
  0x3a   :  { %3543 = vmatmul.mubr.msk.f32.gmra.mxu1 %vm649_vm0, %v84_v60 }
  0x3b   :  { %209 = vperm.xlu1 %3850, %v124_v33   ;;  %206 = vperm.xlu0 %3849, %v123_v34  }
  0x3c   :  { %3545 = vmatprep.mubr.msk.f32.mxu1 %vm649_vm0, %v85_v61 }
  0x3e   :  { %3546 = vmatmul.mubr.msk.f32.gmra.mxu1 %vm649_vm0, %v86_v62 }
  0x3f   :  { %215 = vperm.xlu1 %3850, %v126_v35   ;;  %212 = vperm.xlu0 %3849, %v125_v36  }
  0x40   :  { %3548 = vmatprep.mubr.msk.f32.mxu1 %vm649_vm0, %v87_v63 }
  0x42   :  { %3549 = vmatmul.mubr.msk.f32.gmra.mxu1 %vm649_vm0, %v88_v0 }
  0x43   :  { %221 = vperm.xlu1 %3850, %v128_v37   ;;  %218 = vperm.xlu0 %3849, %v127_v38  }
  0x44   :  { %3551 = vmatprep.mubr.msk.f32.mxu1 %vm649_vm0, %v89_v1 }
  0x46   :  { %3552 = vmatmul.mubr.msk.f32.gmra.mxu1 %vm649_vm0, %v90_v2 }
  0x47   :  { %227 = vperm.xlu1 %3850, %v130_v39   ;;  %224 = vperm.xlu0 %3849, %v129_v40  }
  0x48   :  { %3554 = vmatprep.mubr.msk.f32.mxu1 %vm649_vm0, %v91_v3 }
  0x4a   :  { %3555 = vmatmul.mubr.msk.f32.gmra.mxu1 %vm649_vm0, %v92_v4 }
  0x4b   :  { %3557 = vmatprep.mubr.msk.f32.mxu1 %vm649_vm0, %v93_v5 }
  0x4e   :  { %3558 = vmatmul.mubr.msk.f32.gmra.mxu1 %vm649_vm0, %v94_v6 }
  0x4f   :  { %3560 = vmatprep.mubr.msk.f32.mxu1 %vm649_vm0, %v95_v8 }
  0x52   :  { %3561 = vmatmul.mubr.msk.f32.gmra.mxu1 %vm649_vm0, %v96_v9 }
  0x53   :  { %3563 = vmatprep.mubr.msk.f32.mxu1 %vm649_vm0, %v97_v11 }
  0x56   :  { %3564 = vmatmul.mubr.msk.f32.gmra.mxu1 %vm649_vm0, %v98_v14 }
  0x86   :  { %v141_v12 = vpop.permute.xlu1 %140  ;;  %v135_v13 = vpop.permute.xlu0 %134 }
  0x87   :  { %vm229_vm3 = vcmp.eq.s32.totalorder %v135_v13, %v4221_v10  ;;  %vm231_vm4 = vcmp.eq.s32.totalorder %v141_v12, %v4221_v10 }
  0x88   :  { %v2895_v16 = vsel %vm229_vm3, 1.0, %v3876_v15  ;;  %v2897_v19 = vsel %vm231_vm4, 1.0, %v3876_v15 }
  0x89   :  { %3468 = vmatprep.mubr.msk.f32.mxu0 %vm5093_vm2, %v2895_v16 }
  0x8a   :  { %v144_v17 = vpop.permute.xlu1 %143  ;;  %v138_v18 = vpop.permute.xlu0 %137 }
  0x8b   :  { %vm230_vm5 = vcmp.eq.s32.totalorder %v138_v18, %v4221_v10  ;;  %vm232_vm6 = vcmp.eq.s32.totalorder %v144_v17, %v4221_v10  ;;  %v1375_v17 = vld [vmem:[%s5077_s7 + $0x38] sm:$0xff]  ;;  %v1374_v18 = vld [vmem:[%s5077_s7 + $0x30] sm:$0xff] }
  0x8c   :  { %v2896_v20 = vsel %vm230_vm5, 1.0, %v3876_v15  ;;  %v2898_v23 = vsel %vm232_vm6, 1.0, %v3876_v15  ;;  %3616 = vmatprep.subr.mxu0 %v1375_v17 }
  0x8d   :  { %3469 = vmatmul.mubr.msk.f32.vlgmr.msra.gmra.mxu0 %vm5093_vm2, %v2896_v20 }
  0x8e   :  { %v150_v21 = vpop.permute.xlu1 %149  ;;  %v147_v22 = vpop.permute.xlu0 %146  ;;  %3471 = vmatprep.mubr.msk.f32.mxu0 %vm5093_vm2, %v2897_v19  ;;  %3617 = vmatpush3.msra.mxu0 %v1375_v17  ;;  %v1740_v17 = vld [vmem:[%s5078_s9 + $0x20] sm:$0xff] }
  0x8f   :  { %vm233_vm7 = vcmp.eq.s32.totalorder %v147_v22, %v4221_v10  ;;  %vm234_vm8 = vcmp.eq.s32.totalorder %v150_v21, %v4221_v10  ;;  %3618 = vmatprep.subr.mxu0 %v1374_v18 }
  0x90   :  { %v2899_v24 = vsel %vm233_vm7, 1.0, %v3876_v15  ;;  %v2900_v27 = vsel %vm234_vm8, 1.0, %v3876_v15  ;;  %3619 = vmatpush3.msra.mxu0 %v1374_v18 }
  0x91   :  { %3472 = vmatmul.mubr.msk.f32.gmra.mxu0 %vm5093_vm2, %v2898_v23 }
  0x92   :  { %v156_v25 = vpop.permute.xlu1 %155  ;;  %v153_v26 = vpop.permute.xlu0 %152  ;;  %3474 = vmatprep.mubr.msk.f32.mxu0 %vm5093_vm2, %v2899_v24 }
  0x93   :  { %vm235_vm9 = vcmp.eq.s32.totalorder %v153_v26, %v4221_v10  ;;  %vm236_vm10 = vcmp.eq.s32.totalorder %v156_v25, %v4221_v10 }
  0x94   :  { %v2901_v28 = vsel %vm235_vm9, 1.0, %v3876_v15  ;;  %v2902_v31 = vsel %vm236_vm10, 1.0, %v3876_v15 }
  0x95   :  { %3475 = vmatmul.mubr.msk.f32.gmra.mxu0 %vm5093_vm2, %v2900_v27 }
  0x96   :  { %v162_v29 = vpop.permute.xlu1 %161  ;;  %v159_v30 = vpop.permute.xlu0 %158  ;;  %3477 = vmatprep.mubr.msk.f32.mxu0 %vm5093_vm2, %v2901_v28 }
  0x97   :  { %vm237_vm11 = vcmp.eq.s32.totalorder %v159_v30, %v4221_v10  ;;  %vm238_vm12 = vcmp.eq.s32.totalorder %v162_v29, %v4221_v10 }
  0x98   :  { %v2903_v32 = vsel %vm237_vm11, 1.0, %v3876_v15  ;;  %v2904_v35 = vsel %vm238_vm12, 1.0, %v3876_v15 }
  0x99   :  { %3478 = vmatmul.mubr.msk.f32.gmra.mxu0 %vm5093_vm2, %v2902_v31 }
  0x9a   :  { %v168_v33 = vpop.permute.xlu1 %167  ;;  %v165_v34 = vpop.permute.xlu0 %164  ;;  %3480 = vmatprep.mubr.msk.f32.mxu0 %vm5093_vm2, %v2903_v32 }
  0x9b   :  { %vm239_vm13 = vcmp.eq.s32.totalorder %v165_v34, %v4221_v10  ;;  %vm240_vm14 = vcmp.eq.s32.totalorder %v168_v33, %v4221_v10 }
  0x9c   :  { %v2905_v36 = vsel %vm239_vm13, 1.0, %v3876_v15  ;;  %v2906_v39 = vsel %vm240_vm14, 1.0, %v3876_v15 }
  0x9d   :  { %3481 = vmatmul.mubr.msk.f32.gmra.mxu0 %vm5093_vm2, %v2904_v35 }
  0x9e   :  { %v174_v37 = vpop.permute.xlu1 %173  ;;  %v171_v38 = vpop.permute.xlu0 %170  ;;  %3483 = vmatprep.mubr.msk.f32.mxu0 %vm5093_vm2, %v2905_v36 }
  0x9f   :  { %vm241_vm15 = vcmp.eq.s32.totalorder %v171_v38, %v4221_v10  ;;  %vm242_vm0 = vcmp.eq.s32.totalorder %v174_v37, %v4221_v10 }
  0xa0   :  { %v2907_v40 = vsel %vm241_vm15, 1.0, %v3876_v15  ;;  %v2908_v43 = vsel %vm242_vm0, 1.0, %v3876_v15 }
  0xa1   :  { %3484 = vmatmul.mubr.msk.f32.gmra.mxu0 %vm5093_vm2, %v2906_v39 }
  0xa2   :  { %v180_v41 = vpop.permute.xlu1 %179  ;;  %v177_v42 = vpop.permute.xlu0 %176  ;;  %3486 = vmatprep.mubr.msk.f32.mxu0 %vm5093_vm2, %v2907_v40 }
  0xa3   :  { %vm243_vm3 = vcmp.eq.s32.totalorder %v177_v42, %v4221_v10  ;;  %vm244_vm4 = vcmp.eq.s32.totalorder %v180_v41, %v4221_v10 }
  0xa4   :  { %v2909_v44 = vsel %vm243_vm3, 1.0, %v3876_v15  ;;  %v2910_v47 = vsel %vm244_vm4, 1.0, %v3876_v15 }
  0xa5   :  { %3487 = vmatmul.mubr.msk.f32.gmra.mxu0 %vm5093_vm2, %v2908_v43 }
  0xa6   :  { %v186_v45 = vpop.permute.xlu1 %185  ;;  %v183_v46 = vpop.permute.xlu0 %182  ;;  %3489 = vmatprep.mubr.msk.f32.mxu0 %vm5093_vm2, %v2909_v44 }
  0xa7   :  { %vm245_vm5 = vcmp.eq.s32.totalorder %v183_v46, %v4221_v10  ;;  %vm246_vm6 = vcmp.eq.s32.totalorder %v186_v45, %v4221_v10 }
  0xa8   :  { %v2911_v48 = vsel %vm245_vm5, 1.0, %v3876_v15  ;;  %v2912_v51 = vsel %vm246_vm6, 1.0, %v3876_v15 }
  0xa9   :  { %3490 = vmatmul.mubr.msk.f32.gmra.mxu0 %vm5093_vm2, %v2910_v47 }
  0xaa   :  { %v192_v49 = vpop.permute.xlu1 %191  ;;  %v189_v50 = vpop.permute.xlu0 %188  ;;  %3492 = vmatprep.mubr.msk.f32.mxu0 %vm5093_vm2, %v2911_v48 }
  0xab   :  { %vm247_vm7 = vcmp.eq.s32.totalorder %v189_v50, %v4221_v10  ;;  %vm248_vm8 = vcmp.eq.s32.totalorder %v192_v49, %v4221_v10 }
  0xac   :  { %v2913_v52 = vsel %vm247_vm7, 1.0, %v3876_v15  ;;  %v2914_v55 = vsel %vm248_vm8, 1.0, %v3876_v15  ;;  %vm5094_vm7 = vcmask 39936  }
  0xad   :  { %3493 = vmatmul.mubr.msk.f32.gmra.mxu0 %vm5093_vm2, %v2912_v51  ;;  %v1372_v51 = vld [vmem:[%s5077_s7 + $0x20] sm:$0xff] }
  0xae   :  { %v198_v53 = vpop.permute.xlu1 %197  ;;  %v195_v54 = vpop.permute.xlu0 %194  ;;  %3495 = vmatprep.mubr.msk.f32.mxu0 %vm5093_vm2, %v2913_v52  ;;  %v1371_v52 = vld [vmem:[%s5077_s7 + $0x18] sm:$0xff] }
  0xaf   :  { %vm249_vm9 = vcmp.eq.s32.totalorder %v195_v54, %v4221_v10  ;;  %vm250_vm10 = vcmp.eq.s32.totalorder %v198_v53, %v4221_v10  ;;  %v1370_v54 = vld [vmem:[%s5077_s7 + $0x10] sm:$0xff] }
  0xb0   :  { %v2915_v56 = vsel %vm249_vm9, 1.0, %v3876_v15  ;;  %v2916_v59 = vsel %vm250_vm10, 1.0, %v3876_v15 }
  0xb1   :  { %3496 = vmatmul.mubr.msk.f32.gmra.mxu0 %vm5093_vm2, %v2914_v55  ;;  %v1369_v55 = vld [vmem:[%s5077_s7 + $0x8] sm:$0xff] }
  0xb2   :  { %v204_v57 = vpop.permute.xlu1 %203  ;;  %v201_v58 = vpop.permute.xlu0 %200  ;;  %3498 = vmatprep.mubr.msk.f32.mxu0 %vm5093_vm2, %v2915_v56 }
  0xb3   :  { %vm251_vm11 = vcmp.eq.s32.totalorder %v201_v58, %v4221_v10  ;;  %vm252_vm12 = vcmp.eq.s32.totalorder %v204_v57, %v4221_v10  ;;  %v1368_v57 = vld [vmem:[%s5077_s7] sm:$0xff] }
  0xb4   :  { %v2917_v60 = vsel %vm251_vm11, 1.0, %v3876_v15  ;;  %v2918_v63 = vsel %vm252_vm12, 1.0, %v3876_v15 }
  0xb5   :  { %3499 = vmatmul.mubr.msk.f32.gmra.mxu0 %vm5093_vm2, %v2916_v59 }
  0xb6   :  { %v210_v61 = vpop.permute.xlu1 %209  ;;  %v207_v62 = vpop.permute.xlu0 %206  ;;  %3501 = vmatprep.mubr.msk.f32.mxu0 %vm5093_vm2, %v2917_v60 }
  0xb7   :  { %vm253_vm13 = vcmp.eq.s32.totalorder %v207_v62, %v4221_v10  ;;  %vm254_vm14 = vcmp.eq.s32.totalorder %v210_v61, %v4221_v10 }
  0xb8   :  { %v2919_v0 = vsel %vm253_vm13, 1.0, %v3876_v15  ;;  %v2920_v3 = vsel %vm254_vm14, 1.0, %v3876_v15 }
  0xb9   :  { %3502 = vmatmul.mubr.msk.f32.gmra.mxu0 %vm5093_vm2, %v2918_v63 }
  0xba   :  { %v216_v1 = vpop.permute.xlu1 %215  ;;  %v213_v2 = vpop.permute.xlu0 %212  ;;  %3504 = vmatprep.mubr.msk.f32.mxu0 %vm5093_vm2, %v2919_v0 }
  0xbb   :  { %vm255_vm15 = vcmp.eq.s32.totalorder %v213_v2, %v4221_v10  ;;  %vm256_vm0 = vcmp.eq.s32.totalorder %v216_v1, %v4221_v10 }
  0xbc   :  { %v2921_v4 = vsel %vm255_vm15, 1.0, %v3876_v15  ;;  %v2922_v8 = vsel %vm256_vm0, 1.0, %v3876_v15 }
  0xbd   :  { %3505 = vmatmul.mubr.msk.f32.gmra.mxu0 %vm5093_vm2, %v2920_v3 }
  0xbe   :  { %v222_v5 = vpop.permute.xlu1 %221  ;;  %v219_v6 = vpop.permute.xlu0 %218  ;;  %3507 = vmatprep.mubr.msk.f32.mxu0 %vm5093_vm2, %v2921_v4 }
  0xbf   :  { %vm257_vm3 = vcmp.eq.s32.totalorder %v219_v6, %v4221_v10  ;;  %vm258_vm4 = vcmp.eq.s32.totalorder %v222_v5, %v4221_v10 }
  0xc0   :  { %v2923_v9 = vsel %vm257_vm3, 1.0, %v3876_v15  ;;  %v2924_v13 = vsel %vm258_vm4, 1.0, %v3876_v15 }
  0xc1   :  { %3508 = vmatmul.mubr.msk.f32.gmra.mxu0 %vm5093_vm2, %v2922_v8 }
  0xc2   :  { %v228_v11 = vpop.permute.xlu1 %227  ;;  %v225_v12 = vpop.permute.xlu0 %224  ;;  %3510 = vmatprep.mubr.msk.f32.mxu0 %vm5093_vm2, %v2923_v9 }
  0xc3   :  { %vm259_vm5 = vcmp.eq.s32.totalorder %v225_v12, %v4221_v10  ;;  %vm260_vm6 = vcmp.eq.s32.totalorder %v228_v11, %v4221_v10  ;;  %v1373_v10 = vld [vmem:[%s5077_s7 + $0x28] sm:$0xff]  ;;  %v1743_v12 = vld [vmem:[%s5078_s9 + $0x38] sm:$0xff] }
  0xc4   :  { %v2925_v14 = vsel %vm259_vm5, 1.0, %v3876_v15  ;;  %v2926_v16 = vsel %vm260_vm6, 1.0, %v3876_v15  ;;  %3620 = vmatprep.subr.mxu0 %v1373_v10  ;;  %3680 = vmatprep.subr.mxu1 %v1743_v12 }
  0xc5   :  { %3511 = vmatmul.mubr.msk.f32.gmra.mxu0 %vm5093_vm2, %v2924_v13  ;;  %v1742_v13 = vld [vmem:[%s5078_s9 + $0x30] sm:$0xff] }
  0xc6   :  { %3513 = vmatprep.mubr.msk.f32.mxu0 %vm5093_vm2, %v2925_v14  ;;  %3621 = vmatpush3.msra.mxu0 %v1373_v10  ;;  %v1741_v14 = vld [vmem:[%s5078_s9 + $0x28] sm:$0xff] }
  0xc7   :  { %3622 = vmatprep.subr.mxu0 %v1372_v51 }
  0xc8   :  { %3623 = vmatpush3.msra.mxu0 %v1372_v51 }
  0xc9   :  { %3514 = vmatmul.mubr.msk.f32.gmra.mxu0 %vm5093_vm2, %v2926_v16  ;;  %3624 = vmatprep.subr.mxu0 %v1371_v52 }
  0xca   :  { %3625 = vmatpush3.msra.mxu0 %v1371_v52 }
  0xcb   :  { %3626 = vmatprep.subr.mxu0 %v1370_v54 }
  0xcc   :  { %3627 = vmatpush3.msra.mxu0 %v1370_v54 }
  0xcd   :  { %3628 = vmatprep.subr.mxu0 %v1369_v55 }
  0xce   :  { %3629 = vmatpush3.msra.mxu0 %v1369_v55 }
  0xcf   :  { %3630 = vmatprep.subr.mxu0 %v1368_v57 }
  0xd0   :  { %3631 = vmatpush3.msra.mxu0 %v1368_v57 }
  0xda   :  { %v3520_v53 = vpop.f32.mrf.mxu1 }
  0xdc   :  { %v812_v56 = vpop.f32.mrf.mxu1 }
  0xde   :  { %v3523_v58 = vpop.f32.mrf.mxu1 }
  0xe0   :  { %v822_v59 = vpop.f32.mrf.mxu1 }
  0xe2   :  { %v3526_v60 = vpop.f32.mrf.mxu1 }
  0xe4   :  { %v832_v61 = vpop.f32.mrf.mxu1 }
  0xe6   :  { %v4384_v62 = vpop.f32.mrf.mxu1 }
  0xe8   :  { %v4386_v63 = vpop.f32.mrf.mxu1 }
  0xea   :  { %v4388_v0 = vpop.f32.mrf.mxu1 }
  0xec   :  { %v4390_v1 = vpop.f32.mrf.mxu1 }
  0xee   :  { %v4392_v2 = vpop.f32.mrf.mxu1 }
  0xf0   :  { %v4394_v3 = vpop.f32.mrf.mxu1 }
  0xf2   :  { %v4396_v4 = vpop.f32.mrf.mxu1 }
  0xf4   :  { %v4398_v5 = vpop.f32.mrf.mxu1 }
  0xf6   :  { %v4400_v6 = vpop.f32.mrf.mxu1 }
  0xf8   :  { %v4402_v8 = vpop.f32.mrf.mxu1 }
  0xfa   :  { %v4404_v9 = vpop.f32.mrf.mxu1 }
  0xfc   :  { %v4406_v11 = vpop.f32.mrf.mxu1 }
  0xfe   :  { %v4417_v16 = vpop.f32.mrf.mxu1 }
 0x100   :  { %v4422_v18 = vpop.f32.mrf.mxu1 }
 0x102   :  { %v4424_v10 = vpop.f32.mrf.mxu1 }
 0x14d   :  { %v3470_v19 = vpop.f32.mrf.mxu0 }
 0x14f   :  { %v488_v20 = vpop.f32.mrf.mxu0 }
 0x150   :  { %3568 = vmatprep.mubr.msk.f32.mxu1 %vm5094_vm7, %v488_v20 }
 0x151   :  { %v3473_v21 = vpop.f32.mrf.mxu0  ;;  %3569 = vmatmul.mubr.msk.f32.vlgmr.msra.gmra.mxu1 %vm5094_vm7, %v3470_v19  ;;  %v4426_v19 = vpop.f32.mrf.mxu1 }
 0x152   :  { %3681 = vmatpush3.msra.mxu1 %v1743_v12 }
 0x153   :  { %v498_v22 = vpop.f32.mrf.mxu0  ;;  %3682 = vmatprep.subr.mxu1 %v1742_v13  ;;  %v4428_v20 = vpop.f32.mrf.mxu1 }
 0x154   :  { %3571 = vmatprep.mubr.msk.f32.mxu1 %vm5094_vm7, %v498_v22  ;;  %3683 = vmatpush3.msra.mxu1 %v1742_v13 }
 0x155   :  { %v3476_v23 = vpop.f32.mrf.mxu0  ;;  %3572 = vmatmul.mubr.msk.f32.gmra.mxu1 %vm5094_vm7, %v3473_v21  ;;  %3684 = vmatprep.subr.mxu1 %v1741_v14  ;;  %v4430_v21 = vpop.f32.mrf.mxu1 }
 0x156   :  { %3685 = vmatpush3.msra.mxu1 %v1741_v14 }
 0x157   :  { %v508_v24 = vpop.f32.mrf.mxu0  ;;  %3686 = vmatprep.subr.mxu1 %v1740_v17  ;;  %v4432_v22 = vpop.f32.mrf.mxu1 }
 0x158   :  { %3574 = vmatprep.mubr.msk.f32.mxu1 %vm5094_vm7, %v508_v24  ;;  %3687 = vmatpush3.msra.mxu1 %v1740_v17 }
 0x159   :  { %v3479_v25 = vpop.f32.mrf.mxu0  ;;  %3575 = vmatmul.mubr.msk.f32.gmra.mxu1 %vm5094_vm7, %v3476_v23  ;;  %v4434_v23 = vpop.f32.mrf.mxu1 }
 0x15b   :  { %v518_v26 = vpop.f32.mrf.mxu0  ;;  %v4436_v24 = vpop.f32.mrf.mxu1 }
 0x15c   :  { %3577 = vmatprep.mubr.msk.f32.mxu1 %vm5094_vm7, %v518_v26 }
 0x15d   :  { %v3482_v27 = vpop.f32.mrf.mxu0  ;;  %3578 = vmatmul.mubr.msk.f32.gmra.mxu1 %vm5094_vm7, %v3479_v25  ;;  %v4438_v25 = vpop.f32.mrf.mxu1 }
 0x15f   :  { %v528_v28 = vpop.f32.mrf.mxu0  ;;  %v4440_v26 = vpop.f32.mrf.mxu1 }
 0x160   :  { %3580 = vmatprep.mubr.msk.f32.mxu1 %vm5094_vm7, %v528_v28 }
 0x161   :  { %v3485_v29 = vpop.f32.mrf.mxu0  ;;  %3581 = vmatmul.mubr.msk.f32.gmra.mxu1 %vm5094_vm7, %v3482_v27  ;;  %v4442_v27 = vpop.f32.mrf.mxu1 }
 0x163   :  { %v538_v30 = vpop.f32.mrf.mxu0  ;;  %v4444_v28 = vpop.f32.mrf.mxu1 }
 0x164   :  { %3583 = vmatprep.mubr.msk.f32.mxu1 %vm5094_vm7, %v538_v30 }
 0x165   :  { %v3488_v31 = vpop.f32.mrf.mxu0  ;;  %3584 = vmatmul.mubr.msk.f32.gmra.mxu1 %vm5094_vm7, %v3485_v29  ;;  %v4446_v29 = vpop.f32.mrf.mxu1 }
 0x167   :  { %v548_v32 = vpop.f32.mrf.mxu0 }
 0x168   :  { %3586 = vmatprep.mubr.msk.f32.mxu1 %vm5094_vm7, %v548_v32  ;;  %v4451_v32 = vld [vmem:[%s5079_s6] ss:$0 sm:$0xff] }
 0x169   :  { %v3491_v33 = vpop.f32.mrf.mxu0  ;;  %3587 = vmatmul.mubr.msk.f32.gmra.mxu1 %vm5094_vm7, %v3488_v31 }
 0x16b   :  { %v558_v34 = vpop.f32.mrf.mxu0 }
 0x16c   :  { %3589 = vmatprep.mubr.msk.f32.mxu1 %vm5094_vm7, %v558_v34 }
 0x16d   :  { %v3494_v35 = vpop.f32.mrf.mxu0  ;;  %3590 = vmatmul.mubr.msk.f32.gmra.mxu1 %vm5094_vm7, %v3491_v33 }
 0x16f   :  { %v568_v36 = vpop.f32.mrf.mxu0 }
 0x170   :  { %3592 = vmatprep.mubr.msk.f32.mxu1 %vm5094_vm7, %v568_v36 }
 0x171   :  { %v3497_v37 = vpop.f32.mrf.mxu0  ;;  %3593 = vmatmul.mubr.msk.f32.gmra.mxu1 %vm5094_vm7, %v3494_v35 }
 0x173   :  { %v578_v38 = vpop.f32.mrf.mxu0 }
 0x174   :  { %3595 = vmatprep.mubr.msk.f32.mxu1 %vm5094_vm7, %v578_v38 }
 0x175   :  { %v3500_v39 = vpop.f32.mrf.mxu0  ;;  %3596 = vmatmul.mubr.msk.f32.gmra.mxu1 %vm5094_vm7, %v3497_v37 }
 0x177   :  { %v588_v40 = vpop.f32.mrf.mxu0 }
 0x178   :  { %3598 = vmatprep.mubr.msk.f32.mxu1 %vm5094_vm7, %v588_v40 }
 0x179   :  { %v3503_v41 = vpop.f32.mrf.mxu0  ;;  %3599 = vmatmul.mubr.msk.f32.gmra.mxu1 %vm5094_vm7, %v3500_v39 }
 0x17b   :  { %v598_v42 = vpop.f32.mrf.mxu0 }
 0x17c   :  { %3601 = vmatprep.mubr.msk.f32.mxu1 %vm5094_vm7, %v598_v42 }
 0x17d   :  { %v3506_v43 = vpop.f32.mrf.mxu0  ;;  %3602 = vmatmul.mubr.msk.f32.gmra.mxu1 %vm5094_vm7, %v3503_v41 }
 0x17f   :  { %v608_v44 = vpop.f32.mrf.mxu0 }
 0x180   :  { %3604 = vmatprep.mubr.msk.f32.mxu1 %vm5094_vm7, %v608_v44 }
 0x181   :  { %v3509_v45 = vpop.f32.mrf.mxu0  ;;  %3605 = vmatmul.mubr.msk.f32.gmra.mxu1 %vm5094_vm7, %v3506_v43 }
 0x183   :  { %v618_v46 = vpop.f32.mrf.mxu0 }
 0x184   :  { %3607 = vmatprep.mubr.msk.f32.mxu1 %vm5094_vm7, %v618_v46 }
 0x185   :  { %v3512_v47 = vpop.f32.mrf.mxu0  ;;  %3608 = vmatmul.mubr.msk.f32.gmra.mxu1 %vm5094_vm7, %v3509_v45 }
 0x187   :  { %v628_v48 = vpop.f32.mrf.mxu0 }
 0x188   :  { %3610 = vmatprep.mubr.msk.f32.mxu1 %vm5094_vm7, %v628_v48 }
 0x189   :  { %v3515_v49 = vpop.f32.mrf.mxu0  ;;  %3611 = vmatmul.mubr.msk.f32.gmra.mxu1 %vm5094_vm7, %v3512_v47 }
 0x18b   :  { %v638_v50 = vpop.f32.mrf.mxu0 }
 0x18c   :  { %3613 = vmatprep.mubr.msk.f32.mxu1 %vm5094_vm7, %v638_v50 }
 0x18d   :  { %3614 = vmatmul.mubr.msk.f32.gmra.mxu1 %vm5094_vm7, %v3515_v49 }
 0x211   :  { %v3570_v30 = vpop.f32.mrf.mxu1 }
 0x212   :  { %v1144_v31 = vadd.f32 %v3570_v30, %v3520_v53 }
 0x213   :  { %v1138_v33 = vpop.f32.mrf.mxu1 }
 0x214   :  { %v1139_v34 = vadd.f32 %v1138_v33, %v812_v56  ;;  %v1305_v35 = vadd.f32 %v4451_v32, %v1144_v31 }
 0x215   :  { %v3573_v36 = vpop.f32.mrf.mxu1 }
 0x216   :  { %v1304_v37 = vadd.f32 %v4451_v32, %v1139_v34  ;;  %v1154_v38 = vadd.f32 %v3573_v36, %v3523_v58  ;;  %v1337_v42 = vmax.f32 %v1305_v35, 0.0 }
 0x217   :  { %v1148_v39 = vpop.f32.mrf.mxu1 }
 0x218   :  { %v1336_v40 = vmax.f32 %v1304_v37, 0.0  ;;  %v1149_v41 = vadd.f32 %v1148_v39, %v822_v59  ;;  %v1307_v43 = vadd.f32 %v4451_v32, %v1154_v38 }
 0x219   :  { %v3576_v44 = vpop.f32.mrf.mxu1 }
 0x21a   :  { %v1306_v45 = vadd.f32 %v4451_v32, %v1149_v41  ;;  %v1164_v46 = vadd.f32 %v3576_v44, %v3526_v60  ;;  %3632 = vmatprep.mubr.msk.f32.mxu0 %vm5093_vm2, %v1336_v40  ;;  %v1339_v50 = vmax.f32 %v1307_v43, 0.0 }
 0x21b   :  { %v1158_v47 = vpop.f32.mrf.mxu1  ;;  %3633 = vmatmul.mubr.msk.f32.vlgmr.msra.gmra.mxu0 %vm5093_vm2, %v1337_v42 }
 0x21c   :  { %v1338_v48 = vmax.f32 %v1306_v45, 0.0  ;;  %v1159_v49 = vadd.f32 %v1158_v47, %v832_v61  ;;  %v1309_v51 = vadd.f32 %v4451_v32, %v1164_v46 }
 0x21d   :  { %v3579_v52 = vpop.f32.mrf.mxu1 }
 0x21e   :  { %v1308_v53 = vadd.f32 %v4451_v32, %v1159_v49  ;;  %v1174_v54 = vadd.f32 %v3579_v52, %v4384_v62  ;;  %3635 = vmatprep.mubr.msk.f32.mxu0 %vm5093_vm2, %v1338_v48  ;;  %v1341_v58 = vmax.f32 %v1309_v51, 0.0 }
 0x21f   :  { %v1168_v55 = vpop.f32.mrf.mxu1  ;;  %3636 = vmatmul.mubr.msk.f32.gmra.mxu0 %vm5093_vm2, %v1339_v50 }
 0x220   :  { %v1340_v56 = vmax.f32 %v1308_v53, 0.0  ;;  %v1169_v57 = vadd.f32 %v1168_v55, %v4386_v63  ;;  %v1311_v59 = vadd.f32 %v4451_v32, %v1174_v54 }
 0x221   :  { %v3582_v60 = vpop.f32.mrf.mxu1 }
 0x222   :  { %v1310_v61 = vadd.f32 %v4451_v32, %v1169_v57  ;;  %v1184_v12 = vadd.f32 %v3582_v60, %v4388_v0  ;;  %3638 = vmatprep.mubr.msk.f32.mxu0 %vm5093_vm2, %v1340_v56  ;;  %v1343_v17 = vmax.f32 %v1311_v59, 0.0 }
 0x223   :  { %v1178_v13 = vpop.f32.mrf.mxu1  ;;  %3639 = vmatmul.mubr.msk.f32.gmra.mxu0 %vm5093_vm2, %v1341_v58 }
 0x224   :  { %v1342_v62 = vmax.f32 %v1310_v61, 0.0  ;;  %v1179_v14 = vadd.f32 %v1178_v13, %v4390_v1  ;;  %v1313_v30 = vadd.f32 %v4451_v32, %v1184_v12 }
 0x225   :  { %v3585_v63 = vpop.f32.mrf.mxu1 }
 0x226   :  { %v1312_v31 = vadd.f32 %v4451_v32, %v1179_v14  ;;  %v1194_v33 = vadd.f32 %v3585_v63, %v4392_v2  ;;  %3641 = vmatprep.mubr.msk.f32.mxu0 %vm5093_vm2, %v1342_v62  ;;  %v1345_v36 = vmax.f32 %v1313_v30, 0.0 }
 0x227   :  { %v1188_v34 = vpop.f32.mrf.mxu1  ;;  %3642 = vmatmul.mubr.msk.f32.gmra.mxu0 %vm5093_vm2, %v1343_v17 }
 0x228   :  { %v1344_v0 = vmax.f32 %v1312_v31, 0.0  ;;  %v1189_v35 = vadd.f32 %v1188_v34, %v4394_v3  ;;  %v1315_v37 = vadd.f32 %v4451_v32, %v1194_v33 }
 0x229   :  { %v3588_v1 = vpop.f32.mrf.mxu1 }
 0x22a   :  { %v1314_v38 = vadd.f32 %v4451_v32, %v1189_v35  ;;  %v1204_v39 = vadd.f32 %v3588_v1, %v4396_v4  ;;  %3644 = vmatprep.mubr.msk.f32.mxu0 %vm5093_vm2, %v1344_v0  ;;  %v1347_v42 = vmax.f32 %v1315_v37, 0.0 }
 0x22b   :  { %v1198_v40 = vpop.f32.mrf.mxu1  ;;  %3645 = vmatmul.mubr.msk.f32.gmra.mxu0 %vm5093_vm2, %v1345_v36 }
 0x22c   :  { %v1346_v2 = vmax.f32 %v1314_v38, 0.0  ;;  %v1199_v41 = vadd.f32 %v1198_v40, %v4398_v5  ;;  %v1317_v43 = vadd.f32 %v4451_v32, %v1204_v39 }
 0x22d   :  { %v3591_v3 = vpop.f32.mrf.mxu1 }
 0x22e   :  { %v1316_v44 = vadd.f32 %v4451_v32, %v1199_v41  ;;  %v1214_v45 = vadd.f32 %v3591_v3, %v4400_v6  ;;  %3647 = vmatprep.mubr.msk.f32.mxu0 %vm5093_vm2, %v1346_v2  ;;  %v1349_v48 = vmax.f32 %v1317_v43, 0.0 }
 0x22f   :  { %v1208_v46 = vpop.f32.mrf.mxu1  ;;  %3648 = vmatmul.mubr.msk.f32.gmra.mxu0 %vm5093_vm2, %v1347_v42 }
 0x230   :  { %v1348_v4 = vmax.f32 %v1316_v44, 0.0  ;;  %v1209_v47 = vadd.f32 %v1208_v46, %v4402_v8  ;;  %v1319_v49 = vadd.f32 %v4451_v32, %v1214_v45 }
 0x231   :  { %v3594_v5 = vpop.f32.mrf.mxu1 }
 0x232   :  { %v1318_v50 = vadd.f32 %v4451_v32, %v1209_v47  ;;  %v1224_v51 = vadd.f32 %v3594_v5, %v4404_v9  ;;  %3650 = vmatprep.mubr.msk.f32.mxu0 %vm5093_vm2, %v1348_v4  ;;  %v1351_v54 = vmax.f32 %v1319_v49, 0.0 }
 0x233   :  { %v1218_v52 = vpop.f32.mrf.mxu1  ;;  %3651 = vmatmul.mubr.msk.f32.gmra.mxu0 %vm5093_vm2, %v1349_v48 }
 0x234   :  { %v1350_v6 = vmax.f32 %v1318_v50, 0.0  ;;  %v1219_v53 = vadd.f32 %v1218_v52, %v4406_v11  ;;  %v1321_v55 = vadd.f32 %v4451_v32, %v1224_v51 }
 0x235   :  { %v3597_v8 = vpop.f32.mrf.mxu1 }
 0x236   :  { %v1320_v56 = vadd.f32 %v4451_v32, %v1219_v53  ;;  %v1234_v57 = vadd.f32 %v3597_v8, %v4417_v16  ;;  %3653 = vmatprep.mubr.msk.f32.mxu0 %vm5093_vm2, %v1350_v6  ;;  %v1353_v60 = vmax.f32 %v1321_v55, 0.0  ;;  %v1736_v8 = vld [vmem:[%s5078_s9] sm:$0xff] }
 0x237   :  { %v1228_v58 = vpop.f32.mrf.mxu1  ;;  %3654 = vmatmul.mubr.msk.f32.gmra.mxu0 %vm5093_vm2, %v1351_v54 }
 0x238   :  { %v1352_v9 = vmax.f32 %v1320_v56, 0.0  ;;  %v1229_v59 = vadd.f32 %v1228_v58, %v4422_v18  ;;  %v1323_v61 = vadd.f32 %v4451_v32, %v1234_v57  ;;  %v4558_v56 = vld [vmem:[%s5080_s8] ss:$0 sm:$0xff] }
 0x239   :  { %v3600_v11 = vpop.f32.mrf.mxu1 }
 0x23a   :  { %v1322_v12 = vadd.f32 %v4451_v32, %v1229_v59  ;;  %v1244_v13 = vadd.f32 %v3600_v11, %v4424_v10  ;;  %3656 = vmatprep.mubr.msk.f32.mxu0 %vm5093_vm2, %v1352_v9  ;;  %v1355_v17 = vmax.f32 %v1323_v61, 0.0 }
 0x23b   :  { %v1238_v62 = vpop.f32.mrf.mxu1  ;;  %3657 = vmatmul.mubr.msk.f32.gmra.mxu0 %vm5093_vm2, %v1353_v60 }
 0x23c   :  { %v1354_v16 = vmax.f32 %v1322_v12, 0.0  ;;  %v1239_v14 = vadd.f32 %v1238_v62, %v4426_v19  ;;  %v1325_v30 = vadd.f32 %v4451_v32, %v1244_v13 }
 0x23d   :  { %v3603_v18 = vpop.f32.mrf.mxu1 }
 0x23e   :  { %v1324_v63 = vadd.f32 %v4451_v32, %v1239_v14  ;;  %v1254_v31 = vadd.f32 %v3603_v18, %v4428_v20  ;;  %3659 = vmatprep.mubr.msk.f32.mxu0 %vm5093_vm2, %v1354_v16  ;;  %v1357_v0 = vmax.f32 %v1325_v30, 0.0 }
 0x23f   :  { %v1248_v33 = vpop.f32.mrf.mxu1  ;;  %3660 = vmatmul.mubr.msk.f32.gmra.mxu0 %vm5093_vm2, %v1355_v17 }
 0x240   :  { %v1356_v10 = vmax.f32 %v1324_v63, 0.0  ;;  %v1249_v34 = vadd.f32 %v1248_v33, %v4430_v21  ;;  %v1327_v35 = vadd.f32 %v4451_v32, %v1254_v31 }
 0x241   :  { %v3606_v19 = vpop.f32.mrf.mxu1 }
 0x242   :  { %v1326_v36 = vadd.f32 %v4451_v32, %v1249_v34  ;;  %v1264_v37 = vadd.f32 %v3606_v19, %v4432_v22  ;;  %3662 = vmatprep.mubr.msk.f32.mxu0 %vm5093_vm2, %v1356_v10  ;;  %v1359_v39 = vmax.f32 %v1327_v35, 0.0 }
 0x243   :  { %v1258_v1 = vpop.f32.mrf.mxu1  ;;  %3663 = vmatmul.mubr.msk.f32.gmra.mxu0 %vm5093_vm2, %v1357_v0 }
 0x244   :  { %v1358_v20 = vmax.f32 %v1326_v36, 0.0  ;;  %v1259_v38 = vadd.f32 %v1258_v1, %v4434_v23  ;;  %v1329_v40 = vadd.f32 %v4451_v32, %v1264_v37 }
 0x245   :  { %v3609_v21 = vpop.f32.mrf.mxu1 }
 0x246   :  { %v1328_v2 = vadd.f32 %v4451_v32, %v1259_v38  ;;  %v1274_v41 = vadd.f32 %v3609_v21, %v4436_v24  ;;  %3665 = vmatprep.mubr.msk.f32.mxu0 %vm5093_vm2, %v1358_v20  ;;  %v1361_v3 = vmax.f32 %v1329_v40, 0.0 }
 0x247   :  { %v1268_v42 = vpop.f32.mrf.mxu1  ;;  %3666 = vmatmul.mubr.msk.f32.gmra.mxu0 %vm5093_vm2, %v1359_v39 }
 0x248   :  { %v1360_v22 = vmax.f32 %v1328_v2, 0.0  ;;  %v1269_v43 = vadd.f32 %v1268_v42, %v4438_v25  ;;  %v1331_v44 = vadd.f32 %v4451_v32, %v1274_v41 }
 0x249   :  { %v3612_v23 = vpop.f32.mrf.mxu1 }
 0x24a   :  { %v1330_v45 = vadd.f32 %v4451_v32, %v1269_v43  ;;  %v1284_v46 = vadd.f32 %v3612_v23, %v4440_v26  ;;  %3668 = vmatprep.mubr.msk.f32.mxu0 %vm5093_vm2, %v1360_v22  ;;  %v1363_v48 = vmax.f32 %v1331_v44, 0.0 }
 0x24b   :  { %v1278_v4 = vpop.f32.mrf.mxu1  ;;  %3669 = vmatmul.mubr.msk.f32.gmra.mxu0 %vm5093_vm2, %v1361_v3 }
 0x24c   :  { %v1362_v24 = vmax.f32 %v1330_v45, 0.0  ;;  %v1279_v47 = vadd.f32 %v1278_v4, %v4442_v27  ;;  %v1333_v49 = vadd.f32 %v4451_v32, %v1284_v46 }
 0x24d   :  { %v3615_v25 = vpop.f32.mrf.mxu1 }
 0x24e   :  { %v1332_v5 = vadd.f32 %v4451_v32, %v1279_v47  ;;  %v1294_v50 = vadd.f32 %v3615_v25, %v4444_v28  ;;  %3671 = vmatprep.mubr.msk.f32.mxu0 %vm5093_vm2, %v1362_v24  ;;  %v1365_v6 = vmax.f32 %v1333_v49, 0.0  ;;  %v1739_v28 = vld [vmem:[%s5078_s9 + $0x18] sm:$0xff] }
 0x24f   :  { %v1288_v51 = vpop.f32.mrf.mxu1  ;;  %3672 = vmatmul.mubr.msk.f32.gmra.mxu0 %vm5093_vm2, %v1363_v48  ;;  %3688 = vmatprep.subr.mxu1 %v1739_v28 }
 0x250   :  { %v1364_v26 = vmax.f32 %v1332_v5, 0.0  ;;  %v1289_v52 = vadd.f32 %v1288_v51, %v4446_v29  ;;  %v1335_v53 = vadd.f32 %v4451_v32, %v1294_v50  ;;  %3689 = vmatpush3.msra.mxu1 %v1739_v28  ;;  %v1738_v29 = vld [vmem:[%s5078_s9 + $0x10] sm:$0xff] }
 0x251   :  { %3690 = vmatprep.subr.mxu1 %v1738_v29 }
 0x252   :  { %v1334_v27 = vadd.f32 %v4451_v32, %v1289_v52  ;;  %3674 = vmatprep.mubr.msk.f32.mxu0 %vm5093_vm2, %v1364_v26  ;;  %v1367_v55 = vmax.f32 %v1335_v53, 0.0  ;;  %3691 = vmatpush3.msra.mxu1 %v1738_v29  ;;  %v1737_v32 = vld [vmem:[%s5078_s9 + $0x8] sm:$0xff] }
 0x253   :  { %3675 = vmatmul.mubr.msk.f32.gmra.mxu0 %vm5093_vm2, %v1365_v6  ;;  %3692 = vmatprep.subr.mxu1 %v1737_v32 }
 0x254   :  { %v1366_v54 = vmax.f32 %v1334_v27, 0.0  ;;  %3693 = vmatpush3.msra.mxu1 %v1737_v32 }
 0x255   :  { %3694 = vmatprep.subr.mxu1 %v1736_v8 }
 0x256   :  { %3677 = vmatprep.mubr.msk.f32.mxu0 %vm5093_vm2, %v1366_v54  ;;  %3695 = vmatpush3.msra.mxu1 %v1736_v8 }
 0x257   :  { %3678 = vmatmul.mubr.msk.f32.gmra.mxu0 %vm5093_vm2, %v1367_v55 }
 0x2db   :  { %v3634_v57 = vpop.f32.mrf.mxu0 }
 0x2dc   :  { %v1551_v58 = vadd.f32 %v3634_v57, %v4558_v56 }
 0x2dd   :  { %v1545_v9 = vpop.f32.mrf.mxu0 }
 0x2de   :  { %v1546_v59 = vadd.f32 %v4558_v56, %v1545_v9  ;;  %v1705_v11 = vmax.f32 %v1551_v58, 0.0 }
 0x2df   :  { %v3637_v60 = vpop.f32.mrf.mxu0 }
 0x2e0   :  { %v1704_v61 = vmax.f32 %v1546_v59, 0.0  ;;  %v1561_v12 = vadd.f32 %v3637_v60, %v4558_v56 }
 0x2e1   :  { %v1555_v13 = vpop.f32.mrf.mxu0 }
 0x2e2   :  { %v1556_v62 = vadd.f32 %v4558_v56, %v1555_v13  ;;  %3696 = vmatprep.mubr.msk.f32.mxu1 %vm5093_vm2, %v1704_v61  ;;  %v1707_v17 = vmax.f32 %v1561_v12, 0.0 }
 0x2e3   :  { %v3640_v16 = vpop.f32.mrf.mxu0  ;;  %3697 = vmatmul.mubr.msk.f32.vlgmr.msra.gmra.mxu1 %vm5093_vm2, %v1705_v11 }
 0x2e4   :  { %v1706_v14 = vmax.f32 %v1556_v62, 0.0  ;;  %v1571_v30 = vadd.f32 %v3640_v16, %v4558_v56 }
 0x2e5   :  { %v1565_v18 = vpop.f32.mrf.mxu0 }
 0x2e6   :  { %v1566_v63 = vadd.f32 %v4558_v56, %v1565_v18  ;;  %3699 = vmatprep.mubr.msk.f32.mxu1 %vm5093_vm2, %v1706_v14  ;;  %v1709_v10 = vmax.f32 %v1571_v30, 0.0 }
 0x2e7   :  { %v3643_v31 = vpop.f32.mrf.mxu0  ;;  %3700 = vmatmul.mubr.msk.f32.gmra.mxu1 %vm5093_vm2, %v1707_v17 }
 0x2e8   :  { %v1708_v33 = vmax.f32 %v1566_v63, 0.0  ;;  %v1581_v34 = vadd.f32 %v3643_v31, %v4558_v56 }
 0x2e9   :  { %v1575_v0 = vpop.f32.mrf.mxu0 }
 0x2ea   :  { %v1576_v35 = vadd.f32 %v4558_v56, %v1575_v0  ;;  %3702 = vmatprep.mubr.msk.f32.mxu1 %vm5093_vm2, %v1708_v33  ;;  %v1711_v37 = vmax.f32 %v1581_v34, 0.0 }
 0x2eb   :  { %v3646_v19 = vpop.f32.mrf.mxu0  ;;  %3703 = vmatmul.mubr.msk.f32.gmra.mxu1 %vm5093_vm2, %v1709_v10 }
 0x2ec   :  { %v1710_v36 = vmax.f32 %v1576_v35, 0.0  ;;  %v1591_v1 = vadd.f32 %v3646_v19, %v4558_v56 }
 0x2ed   :  { %v1585_v20 = vpop.f32.mrf.mxu0 }
 0x2ee   :  { %v1586_v38 = vadd.f32 %v4558_v56, %v1585_v20  ;;  %3705 = vmatprep.mubr.msk.f32.mxu1 %vm5093_vm2, %v1710_v36  ;;  %v1713_v21 = vmax.f32 %v1591_v1, 0.0 }
 0x2ef   :  { %v3649_v39 = vpop.f32.mrf.mxu0  ;;  %3706 = vmatmul.mubr.msk.f32.gmra.mxu1 %vm5093_vm2, %v1711_v37 }
 0x2f0   :  { %v1712_v40 = vmax.f32 %v1586_v38, 0.0  ;;  %v1601_v2 = vadd.f32 %v3649_v39, %v4558_v56 }
 0x2f1   :  { %v1595_v41 = vpop.f32.mrf.mxu0 }
 0x2f2   :  { %v1596_v42 = vadd.f32 %v4558_v56, %v1595_v41  ;;  %3708 = vmatprep.mubr.msk.f32.mxu1 %vm5093_vm2, %v1712_v40  ;;  %v1715_v3 = vmax.f32 %v1601_v2, 0.0 }
 0x2f3   :  { %v3652_v22 = vpop.f32.mrf.mxu0  ;;  %3709 = vmatmul.mubr.msk.f32.gmra.mxu1 %vm5093_vm2, %v1713_v21 }
 0x2f4   :  { %v1714_v43 = vmax.f32 %v1596_v42, 0.0  ;;  %v1611_v44 = vadd.f32 %v3652_v22, %v4558_v56 }
 0x2f5   :  { %v1605_v23 = vpop.f32.mrf.mxu0 }
 0x2f6   :  { %v1606_v45 = vadd.f32 %v4558_v56, %v1605_v23  ;;  %3711 = vmatprep.mubr.msk.f32.mxu1 %vm5093_vm2, %v1714_v43  ;;  %v1717_v24 = vmax.f32 %v1611_v44, 0.0  ;;  %v4625_v43 = vshrl.u32 %v131_v7, 7  ;;  %v2072_v44 = vld [vmem:[%s5081_s3] sm:$0x3]  ;;  %v3877_v23 = vmov 1.0  }
 0x2f7   :  { %v3655_v46 = vpop.f32.mrf.mxu0  ;;  %3712 = vmatmul.mubr.msk.f32.gmra.mxu1 %vm5093_vm2, %v1715_v3 }
 0x2f8   :  { %v1716_v4 = vmax.f32 %v1606_v45, 0.0  ;;  %v1621_v47 = vadd.f32 %v3655_v46, %v4558_v56  ;;  %v2088_v3 = vsub.s32 1, %v4625_v43  ;;  %v2084_v7 = vsub.s32 0, %v4625_v43 }
 0x2f9   :  { %v1615_v48 = vpop.f32.mrf.mxu0  ;;  %v4643_v46 = vadd.s32 8, %v4625_v43 }
 0x2fa   :  { %v1616_v49 = vadd.f32 %v4558_v56, %v1615_v48  ;;  %3714 = vmatprep.mubr.msk.f32.mxu1 %vm5093_vm2, %v1716_v4  ;;  %v1719_v50 = vmax.f32 %v1621_v47, 0.0  ;;  %v4640_v45 = vrot.slane %v2072_v44, %v2084_v7  ;;  %v4646_v4 = vadd.s32 16, %v4625_v43 }
 0x2fb   :  { %v3658_v25 = vpop.f32.mrf.mxu0  ;;  %3715 = vmatmul.mubr.msk.f32.gmra.mxu1 %vm5093_vm2, %v1717_v24  ;;  %v4649_v24 = vadd.s32 24, %v4625_v43  ;;  %v4652_v47 = vadd.s32 32, %v4625_v43  ;;  %v4663_v48 = vadd.s32 48, %v4625_v43 }
 0x2fc   :  { %v1718_v5 = vmax.f32 %v1616_v49, 0.0  ;;  %v1631_v51 = vadd.f32 %v3658_v25, %v4558_v56  ;;  %vm2090_vm9 = vcmp.eq.s32.totalorder %v4640_v45, %v4625_v43  ;;  %vm2092_vm11 = vcmp.eq.s32.totalorder %v4640_v45, %v4643_v46 }
 0x2fd   :  { %v1625_v26 = vpop.f32.mrf.mxu0  ;;  %vm2094_vm13 = vcmp.eq.s32.totalorder %v4640_v45, %v4646_v4  ;;  %vm2096_vm15 = vcmp.eq.s32.totalorder %v4640_v45, %v4649_v24  ;;  %vm2098_vm0 = vcmp.eq.s32.totalorder %v4640_v45, %v4652_v47  ;;  %v3091_v49 = vsel %vm2090_vm9, 1.0, %v3876_v15 }
 0x2fe   :  { %v1626_v52 = vadd.f32 %v4558_v56, %v1625_v26  ;;  %3717 = vmatprep.mubr.msk.f32.mxu1 %vm5093_vm2, %v1718_v5  ;;  %v1721_v27 = vmax.f32 %v1631_v51, 0.0  ;;  %v3093_v5 = vsel %vm2092_vm11, 1.0, %v3876_v15  ;;  %vm2102_vm5 = vcmp.eq.s32.totalorder %v4640_v45, %v4663_v48 }
 0x2ff   :  { %v3661_v6 = vpop.f32.mrf.mxu0  ;;  %3718 = vmatmul.mubr.msk.f32.gmra.mxu1 %vm5093_vm2, %v1719_v50 }
 0x300   :  { %v1720_v53 = vmax.f32 %v1626_v52, 0.0  ;;  %v1641_v54 = vadd.f32 %v3661_v6, %v4558_v56  ;;  %v3095_v52 = vsel %vm2094_vm13, 1.0, %v3876_v15 }
 0x301   :  { %v1635_v55 = vpop.f32.mrf.mxu0 }
 0x302   :  { %v1636_v28 = vadd.f32 %v4558_v56, %v1635_v55  ;;  %3720 = vmatprep.mubr.msk.f32.mxu1 %vm5093_vm2, %v1720_v53  ;;  %v1723_v8 = vmax.f32 %v1641_v54, 0.0  ;;  %v4700_v53 = vadd.s32 40, %v4625_v43  ;;  %v3097_v55 = vsel %vm2096_vm15, 1.0, %v3876_v15 }
 0x303   :  { %v3664_v29 = vpop.f32.mrf.mxu0  ;;  %3721 = vmatmul.mubr.msk.f32.gmra.mxu1 %vm5093_vm2, %v1721_v27  ;;  %v3099_v27 = vsel %vm2098_vm0, 1.0, %v3876_v15 }
 0x304   :  { %v1722_v32 = vmax.f32 %v1636_v28, 0.0  ;;  %v1651_v57 = vadd.f32 %v3664_v29, %v4558_v56 }
 0x305   :  { %v1645_v58 = vpop.f32.mrf.mxu0 }
 0x306   :  { %v1646_v9 = vadd.f32 %v4558_v56, %v1645_v58  ;;  %3723 = vmatprep.mubr.msk.f32.mxu1 %vm5093_vm2, %v1722_v32  ;;  %v1725_v61 = vmax.f32 %v1651_v57, 0.0 }
 0x307   :  { %v3667_v59 = vpop.f32.mrf.mxu0  ;;  %3724 = vmatmul.mubr.msk.f32.gmra.mxu1 %vm5093_vm2, %v1723_v8  ;;  %v3103_v8 = vsel %vm2102_vm5, 1.0, %v3876_v15 }
 0x308   :  { %v1724_v60 = vmax.f32 %v1646_v9, 0.0  ;;  %v1661_v11 = vadd.f32 %v3667_v59, %v4558_v56  ;;  %v4739_v59 = vadd.s32 56, %v4625_v43 }
 0x309   :  { %v1655_v12 = vpop.f32.mrf.mxu0 }
 0x30a   :  { %v1656_v13 = vadd.f32 %v4558_v56, %v1655_v12  ;;  %3726 = vmatprep.mubr.msk.f32.mxu1 %vm5093_vm2, %v1724_v60  ;;  %v1727_v14 = vmax.f32 %v1661_v11, 0.0  ;;  %vm2104_vm7 = vcmp.eq.s32.totalorder %v4640_v45, %v4739_v59 }
 0x30b   :  { %v3670_v62 = vpop.f32.mrf.mxu0  ;;  %3727 = vmatmul.mubr.msk.f32.gmra.mxu1 %vm5093_vm2, %v1725_v61 }
 0x30c   :  { %v1726_v16 = vmax.f32 %v1656_v13, 0.0  ;;  %v1671_v17 = vadd.f32 %v3670_v62, %v4558_v56 }
 0x30d   :  { %v1665_v30 = vpop.f32.mrf.mxu0 }
 0x30e   :  { %v1666_v18 = vadd.f32 %v4558_v56, %v1665_v30  ;;  %3729 = vmatprep.mubr.msk.f32.mxu1 %vm5093_vm2, %v1726_v16  ;;  %v1729_v33 = vmax.f32 %v1671_v17, 0.0 }
 0x30f   :  { %v3673_v63 = vpop.f32.mrf.mxu0  ;;  %3730 = vmatmul.mubr.msk.f32.gmra.mxu1 %vm5093_vm2, %v1727_v14  ;;  %v3105_v14 = vsel %vm2104_vm7, 1.0, %v3876_v15 }
 0x310   :  { %v1728_v31 = vmax.f32 %v1666_v18, 0.0  ;;  %v1681_v10 = vadd.f32 %v3673_v63, %v4558_v56 }
 0x311   :  { %v1675_v34 = vpop.f32.mrf.mxu0 }
 0x312   :  { %v1676_v0 = vadd.f32 %v4558_v56, %v1675_v34  ;;  %3732 = vmatprep.mubr.msk.f32.mxu1 %vm5093_vm2, %v1728_v31  ;;  %v1731_v36 = vmax.f32 %v1681_v10, 0.0 }
 0x313   :  { %v3676_v35 = vpop.f32.mrf.mxu0  ;;  %3733 = vmatmul.mubr.msk.f32.gmra.mxu1 %vm5093_vm2, %v1729_v33 }
 0x314   :  { %v1730_v19 = vmax.f32 %v1676_v0, 0.0  ;;  %v1691_v37 = vadd.f32 %v3676_v35, %v4558_v56 }
 0x315   :  { %v1685_v1 = vpop.f32.mrf.mxu0 }
 0x316   :  { %v1686_v20 = vadd.f32 %v4558_v56, %v1685_v1  ;;  %3735 = vmatprep.mubr.msk.f32.mxu1 %vm5093_vm2, %v1730_v19  ;;  %v1733_v40 = vmax.f32 %v1691_v37, 0.0 }
 0x317   :  { %v3679_v38 = vpop.f32.mrf.mxu0  ;;  %3736 = vmatmul.mubr.msk.f32.gmra.mxu1 %vm5093_vm2, %v1731_v36 }
 0x318   :  { %v1732_v39 = vmax.f32 %v1686_v20, 0.0  ;;  %v1701_v21 = vadd.f32 %v3679_v38, %v4558_v56 }
 0x319   :  { %v1695_v2 = vpop.f32.mrf.mxu0 }
 0x31a   :  { %v1696_v41 = vadd.f32 %v4558_v56, %v1695_v2  ;;  %3738 = vmatprep.mubr.msk.f32.mxu1 %vm5093_vm2, %v1732_v39  ;;  %v1735_v22 = vmax.f32 %v1701_v21, 0.0  ;;  %v4631_v56 = vrot.slane %v2072_v44, %v2088_v3 }
 0x31b   :  { %3739 = vmatmul.mubr.msk.f32.gmra.mxu1 %vm5093_vm2, %v1733_v40 }
 0x31c   :  { %v1734_v42 = vmax.f32 %v1696_v41, 0.0  ;;  %vm2091_vm8 = vcmp.eq.s32.totalorder %v4631_v56, %v4625_v43  ;;  %vm2093_vm10 = vcmp.eq.s32.totalorder %v4631_v56, %v4643_v46  ;;  %vm2095_vm12 = vcmp.eq.s32.totalorder %v4631_v56, %v4646_v4  ;;  %v2293_v43 = vld [vmem:[%s5083_s12 + $0x8] sm:$0xff]  ;;  %v2292_v46 = vld [vmem:[%s5083_s12] sm:$0xff] }
 0x31d   :  { %3107 = vmatprep.mubr.msk.f32.mxu0 %vm2091_vm8, %v3877_v23  ;;  %vm2097_vm14 = vcmp.eq.s32.totalorder %v4631_v56, %v4649_v24  ;;  %v3092_v25 = vsel %vm2091_vm8, 1.0, %v3876_v15  ;;  %v3094_v50 = vsel %vm2093_vm10, 1.0, %v3876_v15  ;;  %v3096_v6 = vsel %vm2095_vm12, 1.0, %v3876_v15 }
 0x31e   :  { %3741 = vmatprep.mubr.msk.f32.mxu1 %vm5093_vm2, %v1734_v42  ;;  %v2138_v51 = vadd.f32 %v3092_v25, %v3091_v49  ;;  %v2141_v26 = vadd.f32 %v3094_v50, %v3093_v5  ;;  %vm2099_vm3 = vcmp.eq.s32.totalorder %v4631_v56, %v4652_v47  ;;  %vm2103_vm4 = vcmp.eq.s32.totalorder %v4631_v56, %v4663_v48  ;;  %v4780_v25 = vld [vmem:[%s5082_s10] ss:$0 sm:$0xff] }
 0x31f   :  { %3742 = vmatmul.mubr.msk.f32.gmra.mxu1 %vm5093_vm2, %v1735_v22  ;;  %v2144_v54 = vadd.f32 %v3096_v6, %v3095_v52  ;;  %v3100_v28 = vsel %vm2099_vm3, 1.0, %v3876_v15  ;;  %v3098_v29 = vsel %vm2097_vm14, 1.0, %v3876_v15  ;;  %v3104_v57 = vsel %vm2103_vm4, 1.0, %v3876_v15 }
 0x320   :  { %2139 = vadd.xlane.f32.xlu0 %v2138_v51  ;;  %2142 = vadd.xlane.f32.xlu1 %v2141_v26  ;;  %v2150_v32 = vadd.f32 %v3100_v28, %v3099_v27  ;;  %vm2101_vm6 = vcmp.eq.s32.totalorder %v4631_v56, %v4700_v53  ;;  %vm2100_vm8 = vcmp.eq.s32.totalorder %v4640_v45, %v4700_v53 }
 0x321   :  { %v2147_v60 = vadd.f32 %v3098_v29, %v3097_v55  ;;  %v2156_v61 = vadd.f32 %v3104_v57, %v3103_v8  ;;  %v3101_v11 = vsel %vm2100_vm8, 1.0, %v3876_v15  ;;  %v3102_v12 = vsel %vm2101_vm6, 1.0, %v3876_v15 }
 0x322   :  { %vm2105_vm2 = vcmp.eq.s32.totalorder %v4631_v56, %v4739_v59  ;;  %v2153_v16 = vadd.f32 %v3102_v12, %v3101_v11  ;;  %v2291_v56 = vld [vmem:[%s5084_s11] sm:$0x1f] }
 0x323   :  { %v3106_v17 = vsel %vm2105_vm2, 1.0, %v3876_v15 }
 0x324   :  { %2145 = vadd.xlane.f32.xlu0 %v2144_v54  ;;  %2151 = vadd.xlane.f32.xlu1 %v2150_v32  ;;  %v2159_v63 = vadd.f32 %v3106_v17, %v3105_v14 }
 0x328   :  { %2148 = vadd.xlane.f32.xlu0 %v2147_v60  ;;  %2157 = vadd.xlane.f32.xlu1 %v2156_v61 }
 0x32c   :  { %2154 = vadd.xlane.f32.xlu0 %v2153_v16 }
 0x330   :  { %2160 = vadd.xlane.f32.xlu0 %v2159_v63 }
 0x3a3   :  { %v4730_v58 = vpop.f32.mrf.mxu1 }
 0x3a5   :  { %v4734_v9 = vpop.f32.mrf.mxu1 }
 0x3a7   :  { %v4749_v13 = vpop.f32.mrf.mxu1 }
 0x3a9   :  { %v4751_v62 = vpop.f32.mrf.mxu1  ;;  %v2140_v45 = vpop.xlane.xlu0 %2139 }
 0x3aa   :  { %v2162_v4 = vmax.f32 %v2140_v45, 1.0  ;;  %v2143_v24 = vpop.xlane.xlu1 %2142  ;;  %v2585_v45 = vld [vmem:[%s5085_s14 + $0x30] sm:$0xff] }
 0x3ab   :  { %v4765_v30 = vpop.f32.mrf.mxu1  ;;  %v2163_v48 = vmax.f32 %v2143_v24, 1.0  ;;  %v2583_v24 = vld [vmem:[%s5085_s14 + $0x20] sm:$0xff] }
 0x3ac   :  { %3851 = vrcp.f32 %v2162_v4  ;;  %v2584_v4 = vld [vmem:[%s5085_s14 + $0x28] sm:$0xff] }
 0x3ad   :  { %v4767_v18 = vpop.f32.mrf.mxu1  ;;  %v2146_v47 = vpop.xlane.xlu0 %2145  ;;  %3853 = vrcp.f32 %v2163_v48  ;;  %v2581_v48 = vld [vmem:[%s5085_s14 + $0x10] sm:$0xff] }
 0x3ae   :  { %v2164_v53 = vmax.f32 %v2146_v47, 1.0  ;;  %v2152_v59 = vpop.xlane.xlu1 %2151  ;;  %v2582_v47 = vld [vmem:[%s5085_s14 + $0x18] sm:$0xff] }
 0x3af   :  { %v3707_v31 = vpop.f32.mrf.mxu1 }
 0x3b0   :  { %v1949_v14 = vadd.f32 %v3707_v31, %v4780_v25  ;;  %v1934_v31 = vadd.f32 %v4780_v25, %v4767_v18  ;;  %v1919_v18 = vadd.f32 %v4730_v58, %v4780_v25  ;;  %3855 = vrcp.f32 %v2164_v53  ;;  %v2580_v53 = vld [vmem:[%s5085_s14 + $0x8] sm:$0xff] }
 0x3b1   :  { %v4769_v33 = vpop.f32.mrf.mxu1  ;;  %v2149_v58 = vpop.xlane.xlu0 %2148 }
 0x3b2   :  { %v1944_v63 = vadd.f32 %v4780_v25, %v4769_v33  ;;  %v1929_v33 = vadd.f32 %v4749_v13, %v4780_v25 }
 0x3b3   :  { %v3710_v10 = vpop.f32.mrf.mxu1 }
 0x3b4   :  { %v1959_v61 = vadd.f32 %v3710_v10, %v4780_v25 }
 0x3b5   :  { %v1953_v34 = vpop.f32.mrf.mxu1 }
 0x3b6   :  { %v1954_v12 = vadd.f32 %v4780_v25, %v1953_v34  ;;  %v1939_v34 = vadd.f32 %v4765_v30, %v4780_v25  ;;  %v1924_v30 = vadd.f32 %v4780_v25, %v4751_v62 }
 0x3b7   :  { %v3713_v0 = vpop.f32.mrf.mxu1 }
 0x3b8   :  { %v1969_v32 = vadd.f32 %v3713_v0, %v4780_v25 }
 0x3b9   :  { %v1963_v35 = vpop.f32.mrf.mxu1 }
 0x3ba   :  { %v1964_v57 = vadd.f32 %v4780_v25, %v1963_v35 }
 0x3bb   :  { %v3716_v19 = vpop.f32.mrf.mxu1 }
 0x3bc   :  { %v1979_v54 = vadd.f32 %v3716_v19, %v4780_v25 }
 0x3bd   :  { %v1973_v36 = vpop.f32.mrf.mxu1 }
 0x3be   :  { %v1974_v28 = vadd.f32 %v4780_v25, %v1973_v36 }
 0x3bf   :  { %v3719_v37 = vpop.f32.mrf.mxu1 }
 0x3c0   :  { %v1989_v51 = vadd.f32 %v3719_v37, %v4780_v25  ;;  %v1914_v37 = vadd.f32 %v4780_v25, %v4734_v9  ;;  %v2165_v9 = vmax.f32 %v2149_v58, 1.0  ;;  %v2579_v58 = vld [vmem:[%s5085_s14] sm:$0xff] }
 0x3c1   :  { %v1983_v1 = vpop.f32.mrf.mxu1 }
 0x3c2   :  { %v1984_v6 = vadd.f32 %v4780_v25, %v1983_v1  ;;  %3857 = vrcp.f32 %v2165_v9  ;;  %v2166_v1 = vmax.f32 %v2152_v59, 1.0  ;;  %v2738_v9 = vld [vmem:[%s5086_s16 + $0x38] sm:$0xff]  ;;  %v2737_v59 = vld [vmem:[%s5086_s16 + $0x30] sm:$0xff] }
 0x3c3   :  { %v4771_v20 = vpop.f32.mrf.mxu1 }
 0x3c4   :  { %v1999_v36 = vadd.f32 %v4771_v20, %v4780_v25  ;;  %v3852_v20 = vpop.eup %3851  ;;  %3859 = vrcp.f32 %v2166_v1  ;;  %v2735_v1 = vld [vmem:[%s5086_s16 + $0x20] sm:$0xff] }
 0x3c5   :  { %v4773_v15 = vpop.f32.mrf.mxu1 }
 0x3c6   :  { %v1994_v13 = vadd.f32 %v4780_v25, %v4773_v15 }
 0x3c7   :  { %v3725_v38 = vpop.f32.mrf.mxu1 }
 0x3c8   :  { %v2009_v35 = vadd.f32 %v3725_v38, %v4780_v25  ;;  %v2155_v38 = vpop.xlane.xlu0 %2154 }
 0x3c9   :  { %v4775_v39 = vpop.f32.mrf.mxu1 }
 0x3ca   :  { %v2004_v19 = vadd.f32 %v4780_v25, %v4775_v39 }
 0x3cb   :  { %v3728_v40 = vpop.f32.mrf.mxu1 }
 0x3cc   :  { %v2019_v10 = vadd.f32 %v3728_v40, %v4780_v25 }
 0x3cd   :  { %v2013_v21 = vpop.f32.mrf.mxu1 }
 0x3ce   :  { %v2014_v0 = vadd.f32 %v4780_v25, %v2013_v21 }
 0x3cf   :  { %v3731_v2 = vpop.f32.mrf.mxu1 }
 0x3d0   :  { %v2029_v16 = vadd.f32 %v3731_v2, %v4780_v25  ;;  %v2167_v2 = vmax.f32 %v2155_v38, 1.0 }
 0x3d1   :  { %v2023_v41 = vpop.f32.mrf.mxu1 }
 0x3d2   :  { %v2024_v17 = vadd.f32 %v4780_v25, %v2023_v41  ;;  %v3854_v41 = vpop.eup %3853  ;;  %3861 = vrcp.f32 %v2167_v2 }
 0x3d3   :  { %v3734_v42 = vpop.f32.mrf.mxu1 }
 0x3d4   :  { %v2039_v60 = vadd.f32 %v3734_v42, %v4780_v25 }
 0x3d5   :  { %v2033_v22 = vpop.f32.mrf.mxu1 }
 0x3d6   :  { %v2034_v11 = vadd.f32 %v4780_v25, %v2033_v22  ;;  %v2158_v22 = vpop.xlane.xlu1 %2157 }
 0x3d7   :  { %v3737_v3 = vpop.f32.mrf.mxu1 }
 0x3d8   :  { %v2049_v29 = vadd.f32 %v3737_v3, %v4780_v25 }
 0x3d9   :  { %v2043_v44 = vpop.f32.mrf.mxu1 }
 0x3da   :  { %v2044_v8 = vadd.f32 %v4780_v25, %v2043_v44 }
 0x3db   :  { %v3740_v7 = vpop.f32.mrf.mxu1 }
 0x3dc   :  { %v2059_v27 = vadd.f32 %v3740_v7, %v4780_v25 }
 0x3dd   :  { %v2053_v49 = vpop.f32.mrf.mxu1 }
 0x3de   :  { %v2054_v55 = vadd.f32 %v4780_v25, %v2053_v49  ;;  %v2168_v49 = vmax.f32 %v2158_v22, 1.0 }
 0x3df   :  { %v3743_v5 = vpop.f32.mrf.mxu1 }
 0x3e0   :  { %v2069_v50 = vadd.f32 %v3743_v5, %v4780_v25  ;;  %3863 = vrcp.f32 %v2168_v49 }
 0x3e1   :  { %v2063_v26 = vpop.f32.mrf.mxu1 }
 0x3e2   :  { %v2064_v52 = vadd.f32 %v4780_v25, %v2063_v26  ;;  %3345 = vmatprep.subr.mxu0 %v2069_v50  ;;  %v3856_v25 = vpop.eup %3855  ;;  %v2161_v50 = vpop.xlane.xlu0 %2160 }
 0x3e3   :  { %3346 = vmatpush3.msra.mxu0 %v1989_v51 }
 0x3e4   :  { %3347 = vmatprep.subr.mxu0 %v2064_v52 }
 0x3e5   :  { %3348 = vmatpush3.msra.mxu0 %v1984_v6  ;;  %v2169_v6 = vmax.f32 %v2161_v50, 1.0 }
 0x3e6   :  { %3349 = vmatprep.subr.mxu0 %v2059_v27  ;;  %v3858_v27 = vpop.eup %3857 }
 0x3e7   :  { %3350 = vmatpush3.msra.mxu0 %v1979_v54  ;;  %3865 = vrcp.f32 %v2169_v6 }
 0x3e8   :  { %3351 = vmatprep.subr.mxu0 %v2054_v55 }
 0x3e9   :  { %3352 = vmatpush3.msra.mxu0 %v1974_v28 }
 0x3ea   :  { %3353 = vmatprep.subr.mxu0 %v2049_v29 }
 0x3eb   :  { %3354 = vmatpush3.msra.mxu0 %v1969_v32  ;;  %v3860_v32 = vpop.eup %3859 }
 0x3ec   :  { %3355 = vmatprep.subr.mxu0 %v2044_v8 }
 0x3ed   :  { %3356 = vmatpush3.msra.mxu0 %v1964_v57 }
 0x3ee   :  { %3357 = vmatprep.subr.mxu0 %v2039_v60 }
 0x3ef   :  { %3358 = vmatpush3.msra.mxu0 %v1959_v61 }
 0x3f0   :  { %3359 = vmatprep.subr.mxu0 %v2034_v11  ;;  %v3862_v11 = vpop.eup %3861 }
 0x3f1   :  { %3360 = vmatpush3.msra.mxu0 %v1954_v12 }
 0x3f2   :  { %3361 = vmatprep.subr.mxu0 %v2029_v16 }
 0x3f3   :  { %3362 = vmatpush3.msra.mxu0 %v1949_v14 }
 0x3f4   :  { %3363 = vmatprep.subr.mxu0 %v2024_v17 }
 0x3f5   :  { %3364 = vmatpush3.msra.mxu0 %v1944_v63  ;;  %v3864_v63 = vpop.eup %3863 }
 0x3f6   :  { %3365 = vmatprep.subr.mxu0 %v2019_v10 }
 0x3f7   :  { %3366 = vmatpush3.msra.mxu0 %v1939_v34 }
 0x3f8   :  { %3367 = vmatprep.subr.mxu0 %v2014_v0 }
 0x3f9   :  { %3368 = vmatpush3.msra.mxu0 %v1934_v31 }
 0x3fa   :  { %3369 = vmatprep.subr.mxu0 %v2009_v35  ;;  %v3866_v35 = vpop.eup %3865 }
 0x3fb   :  { %3370 = vmatpush3.msra.mxu0 %v1929_v33 }
 0x3fc   :  { %3371 = vmatprep.subr.mxu0 %v2004_v19 }
 0x3fd   :  { %3372 = vmatpush3.msra.mxu0 %v1924_v30 }
 0x3fe   :  { %3373 = vmatprep.subr.mxu0 %v1999_v36  ;;  %v4909_v36 = vld [vmem:[%s5099_s19] sm:$0xff] }
 0x3ff   :  { %3374 = vmatpush3.msra.mxu0 %v1919_v18  ;;  %v4916_v18 = vld [vmem:[%s5099_s19 + $0x8] sm:$0xff] }
 0x400   :  { %3375 = vmatprep.subr.mxu0 %v1994_v13  ;;  %v4923_v13 = vld [vmem:[%s5099_s19 + $0x10] sm:$0xff] }
 0x401   :  { %3376 = vmatpush3.msra.mxu0 %v1914_v37  ;;  %v4930_v37 = vld [vmem:[%s5099_s19 + $0x18] sm:$0xff] }
 0x402   :  { %3108 = vmatmul.mubr.msk.f32.vlgmr.msra.gmra.mxu0 %vm2090_vm9, %v3877_v23  ;;  %3744 = vmatprep.subr.mxu0 %v2293_v43 }
 0x403   :  { %3109 = vmatprep.mubr.msk.f32.mxu0 %vm2093_vm10, %v3877_v23  ;;  %3745 = vmatpush3.msra.mxu0 %v2293_v43  ;;  %v4937_v43 = vld [vmem:[%s5099_s19 + $0x20] sm:$0xff] }
 0x404   :  { %3746 = vmatprep.subr.mxu0 %v2292_v46 }
 0x405   :  { %3747 = vmatpush3.msra.mxu0 %v2292_v46  ;;  %v4944_v46 = vld [vmem:[%s5099_s19 + $0x28] sm:$0xff] }
 0x406   :  { %3110 = vmatmul.mubr.msk.f32.gmra.mxu0 %vm2092_vm11, %v3877_v23  ;;  %3760 = vmatprep.subr.msk.mxu0 %vm1068_vm1, %v2291_v56 }
 0x407   :  { %3111 = vmatprep.mubr.msk.f32.mxu0 %vm2095_vm12, %v3877_v23 }
 0x40a   :  { %3112 = vmatmul.mubr.msk.f32.gmra.mxu0 %vm2094_vm13, %v3877_v23 }
 0x40b   :  { %3113 = vmatprep.mubr.msk.f32.mxu0 %vm2097_vm14, %v3877_v23 }
 0x40e   :  { %3114 = vmatmul.mubr.msk.f32.gmra.mxu0 %vm2096_vm15, %v3877_v23  ;;  %vm5109_vm15 = vcmask 523264  }
 0x40f   :  { %3115 = vmatprep.mubr.msk.f32.mxu0 %vm2099_vm3, %v3877_v23 }
 0x412   :  { %3116 = vmatmul.mubr.msk.f32.gmra.mxu0 %vm2098_vm0, %v3877_v23  ;;  %vm5110_vm0 = vmmov %vm5109_vm15 }
 0x413   :  { %3117 = vmatprep.mubr.msk.f32.mxu0 %vm2101_vm6, %v3877_v23  ;;  %vm5111_vm3 = vmmov %vm5110_vm0 }
 0x414   :  { %vm5114_vm6 = vmmov %vm5110_vm0 }
 0x416   :  { %3118 = vmatmul.mubr.msk.f32.gmra.mxu0 %vm2100_vm8, %v3877_v23  ;;  %vm5115_vm8 = vmmov %vm5110_vm0 }
 0x417   :  { %3119 = vmatprep.mubr.msk.f32.mxu0 %vm2103_vm4, %v3877_v23  ;;  %vm5112_vm4 = vmmov %vm5110_vm0 }
 0x41a   :  { %3120 = vmatmul.mubr.msk.f32.gmra.mxu0 %vm2102_vm5, %v3877_v23  ;;  %vm5113_vm5 = vmmov %vm5110_vm0 }
 0x41b   :  { %3121 = vmatprep.mubr.msk.f32.mxu0 %vm2105_vm2, %v3877_v23  ;;  %vm2294_vm2 = vcmask 130048  }
 0x41e   :  { %3122 = vmatmul.mubr.msk.f32.gmra.mxu0 %vm2104_vm7, %v3877_v23  ;;  %v2586_v23 = vld [vmem:[%s5085_s14 + $0x38] sm:$0xff] }
 0x41f   :  { %3774 = vmatprep.subr.mxu1 %v2586_v23 }
 0x420   :  { %3775 = vmatpush3.msra.mxu1 %v2586_v23  ;;  %v4958_v23 = vld [vmem:[%s5099_s19 + $0x38] sm:$0xff] }
 0x421   :  { %3776 = vmatprep.subr.mxu1 %v2585_v45 }
 0x422   :  { %3777 = vmatpush3.msra.mxu1 %v2585_v45  ;;  %v3141_v45 = vld [vmem:[%s5088_s15] ss:$0 sm:$0xff] }
 0x423   :  { %3778 = vmatprep.subr.mxu1 %v2584_v4 }
 0x424   :  { %3779 = vmatpush3.msra.mxu1 %v2584_v4 }
 0x425   :  { %3780 = vmatprep.subr.mxu1 %v2583_v24 }
 0x426   :  { %3781 = vmatpush3.msra.mxu1 %v2583_v24 }
 0x427   :  { %3782 = vmatprep.subr.mxu1 %v2582_v47 }
 0x428   :  { %3783 = vmatpush3.msra.mxu1 %v2582_v47 }
 0x429   :  { %3784 = vmatprep.subr.mxu1 %v2581_v48 }
 0x42a   :  { %3785 = vmatpush3.msra.mxu1 %v2581_v48 }
 0x42b   :  { %3786 = vmatprep.subr.mxu1 %v2580_v53 }
 0x42c   :  { %3787 = vmatpush3.msra.mxu1 %v2580_v53 }
 0x42d   :  { %3788 = vmatprep.subr.mxu1 %v2579_v58 }
 0x42e   :  { %3789 = vmatpush3.msra.mxu1 %v2579_v58 }
 0x42f   :  { %3830 = vmatprep.subr.mxu1 %v2738_v9 }
 0x4c2   :  { %v3377_v62 = vpop.f32.mrf.mxu0 }
 0x4c4   :  { %v3378_v15 = vpop.f32.mrf.mxu0 }
 0x4c5   :  { %v3379_v39 = vadd.f32 %v3378_v15, %v3377_v62  ;;  %v2736_v62 = vld [vmem:[%s5086_s16 + $0x28] sm:$0xff] }
 0x4c6   :  { %v3380_v40 = vpop.f32.mrf.mxu0 }
 0x4c7   :  { %v2283_v21 = vmul.f32 %v3852_v20, %v3379_v39 }
 0x4c8   :  { %v3381_v42 = vpop.f32.mrf.mxu0 }
 0x4c9   :  { %v3382_v3 = vadd.f32 %v3381_v42, %v3380_v40  ;;  %3748 = vmatprep.mubr.msk.f32.mxu0 %vm2294_vm2, %v2283_v21 }
 0x4ca   :  { %v3383_v44 = vpop.f32.mrf.mxu0 }
 0x4cb   :  { %v2284_v7 = vmul.f32 %v3854_v41, %v3382_v3  ;;  %v3140_v3 = vld [vmem:[%s5087_s13] ss:$0 sm:$0xff] }
 0x4cc   :  { %v3384_v5 = vpop.f32.mrf.mxu0 }
 0x4cd   :  { %v3385_v51 = vadd.f32 %v3384_v5, %v3383_v44  ;;  %3749 = vmatmul.mubr.msk.f32.vlgmr.msra.gmra.mxu0 %vm2294_vm2, %v2284_v7 }
 0x4ce   :  { %v3386_v26 = vpop.f32.mrf.mxu0  ;;  %3761 = vmatpush3.msk.msra.mxu0 %vm1068_vm1, %v2291_v56  ;;  %vm5101_vm1 = vcmask 39936   ;;  %v4951_v56 = vld [vmem:[%s5099_s19 + $0x30] sm:$0xff] }
 0x4cf   :  { %v2285_v52 = vmul.f32 %v3856_v25, %v3385_v51  ;;  %vm5102_vm7 = vmmov %vm5101_vm1  ;;  %3802 = vmatprep.subr.mxu0 %v2738_v9 }
 0x4d0   :  { %v3387_v54 = vpop.f32.mrf.mxu0  ;;  %vm5103_vm9 = vmmov %vm5101_vm1 }
 0x4d1   :  { %v3388_v55 = vadd.f32 %v3387_v54, %v3386_v26  ;;  %3751 = vmatprep.mubr.msk.f32.mxu0 %vm2294_vm2, %v2285_v52  ;;  %vm5104_vm10 = vmmov %vm5101_vm1 }
 0x4d2   :  { %v3389_v28 = vpop.f32.mrf.mxu0  ;;  %vm5105_vm11 = vmmov %vm5101_vm1 }
 0x4d3   :  { %v2286_v29 = vmul.f32 %v3858_v27, %v3388_v55  ;;  %vm5106_vm12 = vmmov %vm5101_vm1 }
 0x4d4   :  { %v3390_v8 = vpop.f32.mrf.mxu0  ;;  %vm5107_vm13 = vmmov %vm5101_vm1 }
 0x4d5   :  { %v3391_v57 = vadd.f32 %v3390_v8, %v3389_v28  ;;  %3752 = vmatmul.mubr.msk.f32.gmra.mxu0 %vm2294_vm2, %v2286_v29  ;;  %vm5108_vm14 = vmmov %vm5101_vm1 }
 0x4d6   :  { %v3392_v60 = vpop.f32.mrf.mxu0 }
 0x4d7   :  { %v2287_v61 = vmul.f32 %v3860_v32, %v3391_v57 }
 0x4d8   :  { %v3393_v12 = vpop.f32.mrf.mxu0 }
 0x4d9   :  { %v3394_v16 = vadd.f32 %v3393_v12, %v3392_v60  ;;  %3754 = vmatprep.mubr.msk.f32.mxu0 %vm2294_vm2, %v2287_v61 }
 0x4da   :  { %v3395_v14 = vpop.f32.mrf.mxu0 }
 0x4db   :  { %v2288_v17 = vmul.f32 %v3862_v11, %v3394_v16 }
 0x4dc   :  { %v3396_v10 = vpop.f32.mrf.mxu0 }
 0x4dd   :  { %v3397_v34 = vadd.f32 %v3396_v10, %v3395_v14  ;;  %3755 = vmatmul.mubr.msk.f32.gmra.mxu0 %vm2294_vm2, %v2288_v17 }
 0x4de   :  { %v3398_v0 = vpop.f32.mrf.mxu0 }
 0x4df   :  { %v2289_v31 = vmul.f32 %v3864_v63, %v3397_v34 }
 0x4e0   :  { %v3399_v33 = vpop.f32.mrf.mxu0 }
 0x4e1   :  { %v3400_v19 = vadd.f32 %v3399_v33, %v3398_v0  ;;  %3757 = vmatprep.mubr.msk.f32.mxu0 %vm2294_vm2, %v2289_v31  ;;  %v2733_v33 = vld [vmem:[%s5086_s16 + $0x10] sm:$0xff] }
 0x4e3   :  { %v2290_v30 = vmul.f32 %v3866_v35, %v3400_v19  ;;  %v2734_v35 = vld [vmem:[%s5086_s16 + $0x18] sm:$0xff]  ;;  %v2732_v19 = vld [vmem:[%s5086_s16 + $0x8] sm:$0xff] }
 0x4e5   :  { %3758 = vmatmul.mubr.msk.f32.gmra.mxu0 %vm2294_vm2, %v2290_v30  ;;  %vm5116_vm2 = vmmov %vm5110_vm0  ;;  %v2731_v30 = vld [vmem:[%s5086_s16] sm:$0xff] }
 0x4e6   :  { %3762 = vmatprep.mubr.msk.f32.mxu0 %vm5101_vm1, %v4909_v36  ;;  %vm5117_vm1 = vmmov %vm5110_vm0 }
 0x4e9   :  { %3763 = vmatmul.mubr.msk.f32.vlgmr.msra.gmra.mxu0 %vm5102_vm7, %v4916_v18  ;;  %vm5118_vm7 = vmmov %vm5110_vm0 }
 0x4ea   :  { %3765 = vmatprep.mubr.msk.f32.mxu0 %vm5103_vm9, %v4923_v13  ;;  %3803 = vmatpush3.msra.mxu0 %v2738_v9  ;;  %vm5119_vm9 = vmmov %vm5110_vm0 }
 0x4eb   :  { %3804 = vmatprep.subr.mxu0 %v2737_v59 }
 0x4ec   :  { %3805 = vmatpush3.msra.mxu0 %v2737_v59 }
 0x4ed   :  { %3766 = vmatmul.mubr.msk.f32.gmra.mxu0 %vm5104_vm10, %v4930_v37  ;;  %3806 = vmatprep.subr.mxu0 %v2736_v62  ;;  %vm5120_vm10 = vmmov %vm5110_vm0 }
 0x4ee   :  { %3768 = vmatprep.mubr.msk.f32.mxu0 %vm5105_vm11, %v4937_v43  ;;  %3807 = vmatpush3.msra.mxu0 %v2736_v62  ;;  %vm5121_vm11 = vmmov %vm5110_vm0 }
 0x4ef   :  { %3808 = vmatprep.subr.mxu0 %v2735_v1 }
 0x4f0   :  { %3809 = vmatpush3.msra.mxu0 %v2735_v1 }
 0x4f1   :  { %3769 = vmatmul.mubr.msk.f32.gmra.mxu0 %vm5106_vm12, %v4944_v46  ;;  %3810 = vmatprep.subr.mxu0 %v2734_v35  ;;  %vm5122_vm12 = vmmov %vm5110_vm0 }
 0x4f2   :  { %3771 = vmatprep.mubr.msk.f32.mxu0 %vm5107_vm13, %v4951_v56  ;;  %3811 = vmatpush3.msra.mxu0 %v2734_v35  ;;  %vm5123_vm13 = vmmov %vm5110_vm0 }
 0x4f3   :  { %3812 = vmatprep.subr.mxu0 %v2733_v33 }
 0x4f4   :  { %3813 = vmatpush3.msra.mxu0 %v2733_v33 }
 0x4f5   :  { %3772 = vmatmul.mubr.msk.f32.gmra.mxu0 %vm5108_vm14, %v4958_v23  ;;  %3814 = vmatprep.subr.mxu0 %v2732_v19  ;;  %vm5124_vm14 = vmmov %vm5110_vm0 }
 0x4f6   :  { %3815 = vmatpush3.msra.mxu0 %v2732_v19 }
 0x4f7   :  { %3816 = vmatprep.subr.mxu0 %v2731_v30 }
 0x4f8   :  { %3817 = vmatpush3.msra.mxu0 %v2731_v30 }
 0x58d   :  { %v3750_v20 = vpop.f32.mrf.mxu0 }
 0x58f   :  { %v2385_v15 = vpop.f32.mrf.mxu0 }
 0x595   :  { %v3753_v38 = vpop.f32.mrf.mxu0 }
 0x597   :  { %v2395_v39 = vpop.f32.mrf.mxu0 }
 0x59d   :  { %v3756_v40 = vpop.f32.mrf.mxu0 }
 0x59f   :  { %v2405_v21 = vpop.f32.mrf.mxu0 }
 0x5a5   :  { %v3759_v2 = vpop.f32.mrf.mxu0 }
 0x5a7   :  { %v2415_v41 = vpop.f32.mrf.mxu0 }
 0x5a9   :  { %v3764_v42 = vpop.f32.mrf.mxu0 }
 0x5aa   :  { %v2523_v22 = vadd.f32 %v3764_v42, %v3750_v20 }
 0x5ab   :  { %v2517_v44 = vpop.f32.mrf.mxu0 }
 0x5ac   :  { %v2518_v7 = vadd.f32 %v2517_v44, %v2385_v15  ;;  %v2564_v49 = vadd.f32 %v3140_v3, %v2523_v22 }
 0x5ad   :  { %v3767_v25 = vpop.f32.mrf.mxu0 }
 0x5ae   :  { %v2563_v5 = vadd.f32 %v3140_v3, %v2518_v7  ;;  %v2533_v50 = vadd.f32 %v3767_v25, %v3753_v38  ;;  %v2572_v6 = vmax.f32 %v2564_v49, 0.0  ;;  %v3150_v25 = vld [vmem:[%s5089_s17] ss:$0 sm:$0xff] }
 0x5af   :  { %v2527_v51 = vpop.f32.mrf.mxu0 }
 0x5b0   :  { %v2571_v26 = vmax.f32 %v2563_v5, 0.0  ;;  %v2528_v52 = vadd.f32 %v2527_v51, %v2395_v39  ;;  %v2566_v27 = vadd.f32 %v3140_v3, %v2533_v50 }
 0x5b1   :  { %v3770_v54 = vpop.f32.mrf.mxu0 }
 0x5b2   :  { %v2565_v55 = vadd.f32 %v3140_v3, %v2528_v52  ;;  %3790 = vmatprep.mubr.msk.f32.mxu1 %vm5109_vm15, %v2571_v26  ;;  %v2543_v28 = vadd.f32 %v3770_v54, %v3756_v40  ;;  %v2574_v57 = vmax.f32 %v2566_v27, 0.0  ;;  %vm5125_vm15 = vcmask 39936  }
 0x5b3   :  { %3791 = vmatmul.mubr.msk.f32.vlgmr.msra.gmra.mxu1 %vm5110_vm0, %v2572_v6  ;;  %v2537_v29 = vpop.f32.mrf.mxu0  ;;  %vm5126_vm0 = vmmov %vm5125_vm15 }
 0x5b4   :  { %v2573_v32 = vmax.f32 %v2565_v55, 0.0  ;;  %v2538_v8 = vadd.f32 %v2537_v29, %v2405_v21  ;;  %3838 = vmatpush3.msra.mxu1 %v2738_v9  ;;  %v2568_v60 = vadd.f32 %v3140_v3, %v2543_v28 }
 0x5b5   :  { %v3773_v61 = vpop.f32.mrf.mxu0  ;;  %3831 = vmatprep.subr.mxu1 %v2737_v59 }
 0x5b6   :  { %v2567_v11 = vadd.f32 %v3140_v3, %v2538_v8  ;;  %3793 = vmatprep.mubr.msk.f32.mxu1 %vm5111_vm3, %v2573_v32  ;;  %v2553_v12 = vadd.f32 %v3773_v61, %v3759_v2  ;;  %3839 = vmatpush3.msra.mxu1 %v2737_v59  ;;  %v2576_v63 = vmax.f32 %v2568_v60, 0.0  ;;  %vm5127_vm3 = vmmov %vm5126_vm0 }
 0x5b7   :  { %3794 = vmatmul.mubr.msk.f32.gmra.mxu1 %vm5112_vm4, %v2574_v57  ;;  %v2547_v16 = vpop.f32.mrf.mxu0  ;;  %3832 = vmatprep.subr.mxu1 %v2736_v62  ;;  %vm5128_vm4 = vmmov %vm5126_vm0 }
 0x5b8   :  { %v2575_v14 = vmax.f32 %v2567_v11, 0.0  ;;  %v2548_v17 = vadd.f32 %v2547_v16, %v2415_v41  ;;  %3840 = vmatpush3.msra.mxu1 %v2736_v62  ;;  %v2570_v10 = vadd.f32 %v3140_v3, %v2553_v12 }
 0x5b9   :  { %3833 = vmatprep.subr.mxu1 %v2735_v1 }
 0x5ba   :  { %3796 = vmatprep.mubr.msk.f32.mxu1 %vm5113_vm5, %v2575_v14  ;;  %v2569_v34 = vadd.f32 %v3140_v3, %v2548_v17  ;;  %3841 = vmatpush3.msra.mxu1 %v2735_v1  ;;  %v2578_v31 = vmax.f32 %v2570_v10, 0.0  ;;  %vm5129_vm5 = vmmov %vm5126_vm0 }
 0x5bb   :  { %3797 = vmatmul.mubr.msk.f32.gmra.mxu1 %vm5114_vm6, %v2576_v63  ;;  %3834 = vmatprep.subr.mxu1 %v2734_v35  ;;  %vm5130_vm6 = vmmov %vm5126_vm0 }
 0x5bc   :  { %v2577_v0 = vmax.f32 %v2569_v34, 0.0  ;;  %3842 = vmatpush3.msra.mxu1 %v2734_v35 }
 0x5bd   :  { %3835 = vmatprep.subr.mxu1 %v2733_v33 }
 0x5be   :  { %3799 = vmatprep.mubr.msk.f32.mxu1 %vm5115_vm8, %v2577_v0  ;;  %3843 = vmatpush3.msra.mxu1 %v2733_v33  ;;  %vm5131_vm8 = vmmov %vm5126_vm0 }
 0x5bf   :  { %3800 = vmatmul.mubr.msk.f32.gmra.mxu1 %vm5116_vm2, %v2578_v31  ;;  %3836 = vmatprep.subr.mxu1 %v2732_v19  ;;  %vm5132_vm2 = vmmov %vm5126_vm0 }
 0x5c0   :  { %3844 = vmatpush3.msra.mxu1 %v2732_v19 }
 0x5c1   :  { %3837 = vmatprep.subr.mxu1 %v2731_v30 }
 0x5c2   :  { %3845 = vmatpush3.msra.mxu1 %v2731_v30 }
 0x673   :  { %v3792_v4 = vpop.f32.mrf.mxu1 }
 0x674   :  { %v2690_v24 = vadd.f32 %v3792_v4, %v3141_v45 }
 0x675   :  { %v2684_v47 = vpop.f32.mrf.mxu1 }
 0x676   :  { %v2685_v48 = vadd.f32 %v3141_v45, %v2684_v47  ;;  %v2724_v9 = vmax.f32 %v2690_v24, 0.0 }
 0x677   :  { %v3795_v53 = vpop.f32.mrf.mxu1 }
 0x678   :  { %v2723_v58 = vmax.f32 %v2685_v48, 0.0  ;;  %v2700_v59 = vadd.f32 %v3795_v53, %v3141_v45 }
 0x679   :  { %v2694_v62 = vpop.f32.mrf.mxu1 }
 0x67a   :  { %v2695_v1 = vadd.f32 %v3141_v45, %v2694_v62  ;;  %3818 = vmatprep.mubr.msk.f32.mxu0 %vm5117_vm1, %v2723_v58  ;;  %v2726_v38 = vmax.f32 %v2700_v59, 0.0 }
 0x67b   :  { %3819 = vmatmul.mubr.msk.f32.vlgmr.msra.gmra.mxu0 %vm5118_vm7, %v2724_v9  ;;  %v3798_v20 = vpop.f32.mrf.mxu1 }
 0x67c   :  { %v2725_v15 = vmax.f32 %v2695_v1, 0.0  ;;  %v2710_v39 = vadd.f32 %v3798_v20, %v3141_v45 }
 0x67d   :  { %v2704_v40 = vpop.f32.mrf.mxu1 }
 0x67e   :  { %3821 = vmatprep.mubr.msk.f32.mxu0 %vm5119_vm9, %v2725_v15  ;;  %v2705_v21 = vadd.f32 %v3141_v45, %v2704_v40  ;;  %v2728_v42 = vmax.f32 %v2710_v39, 0.0 }
 0x67f   :  { %3822 = vmatmul.mubr.msk.f32.gmra.mxu0 %vm5120_vm10, %v2726_v38  ;;  %v3801_v2 = vpop.f32.mrf.mxu1 }
 0x680   :  { %v2727_v41 = vmax.f32 %v2705_v21, 0.0  ;;  %v2720_v22 = vadd.f32 %v3801_v2, %v3141_v45 }
 0x681   :  { %v2714_v3 = vpop.f32.mrf.mxu1 }
 0x682   :  { %3824 = vmatprep.mubr.msk.f32.mxu0 %vm5121_vm11, %v2727_v41  ;;  %v2715_v44 = vadd.f32 %v3141_v45, %v2714_v3  ;;  %v2730_v49 = vmax.f32 %v2720_v22, 0.0 }
 0x683   :  { %3825 = vmatmul.mubr.msk.f32.gmra.mxu0 %vm5122_vm12, %v2728_v42 }
 0x684   :  { %v2729_v7 = vmax.f32 %v2715_v44, 0.0 }
 0x686   :  { %3827 = vmatprep.mubr.msk.f32.mxu1 %vm5123_vm13, %v2729_v7 }
 0x687   :  { %3828 = vmatmul.mubr.msk.f32.vlgmr.msra.gmra.mxu1 %vm5124_vm14, %v2730_v49 }
 0x73b   :  { %v3820_v5 = vpop.f32.mrf.mxu0 }
 0x73c   :  { %v2842_v50 = vadd.f32 %v3820_v5, %v3150_v25 }
 0x73d   :  { %v2836_v51 = vpop.f32.mrf.mxu0 }
 0x73e   :  { %v2876_v26 = vadd.f32 %v4916_v18, %v2842_v50  ;;  %v2837_v52 = vadd.f32 %v3150_v25, %v2836_v51 }
 0x73f   :  { %v3823_v6 = vpop.f32.mrf.mxu0 }
 0x740   :  { %2884 = vst.msk [vmem:[%s5090_s18 + $0x8] sm:$0xff] %vm5125_vm15, %v2876_v26  ;;  %v2875_v27 = vadd.f32 %v4909_v36, %v2837_v52  ;;  %v2852_v54 = vadd.f32 %v3823_v6, %v3150_v25 }
 0x741   :  { %v2846_v55 = vpop.f32.mrf.mxu0 }
 0x742   :  { %2883 = vst.msk [vmem:[%s5090_s18] sm:$0xff] %vm5126_vm0, %v2875_v27  ;;  %v2878_v28 = vadd.f32 %v4930_v37, %v2852_v54  ;;  %v2847_v29 = vadd.f32 %v3150_v25, %v2846_v55 }
 0x743   :  { %v3826_v18 = vpop.f32.mrf.mxu0 }
 0x744   :  { %2886 = vst.msk [vmem:[%s5090_s18 + $0x18] sm:$0xff] %vm5127_vm3, %v2878_v28  ;;  %v2877_v32 = vadd.f32 %v4923_v13, %v2847_v29  ;;  %v2862_v8 = vadd.f32 %v3826_v18, %v3150_v25 }
 0x745   :  { %v2856_v36 = vpop.f32.mrf.mxu0 }
 0x746   :  { %2885 = vst.msk [vmem:[%s5090_s18 + $0x10] sm:$0xff] %vm5128_vm4, %v2877_v32  ;;  %v2880_v57 = vadd.f32 %v4944_v46, %v2862_v8  ;;  %v2857_v60 = vadd.f32 %v3150_v25, %v2856_v36 }
 0x747   :  { %v3829_v37 = vpop.f32.mrf.mxu1 }
 0x748   :  { %2888 = vst.msk [vmem:[%s5090_s18 + $0x28] sm:$0xff] %vm5129_vm5, %v2880_v57  ;;  %v2879_v61 = vadd.f32 %v4937_v43, %v2857_v60  ;;  %v2872_v11 = vadd.f32 %v3829_v37, %v3150_v25 }
 0x749   :  { %v2866_v13 = vpop.f32.mrf.mxu1 }
 0x74a   :  { %2887 = vst.msk [vmem:[%s5090_s18 + $0x20] sm:$0xff] %vm5130_vm6, %v2879_v61  ;;  %v2882_v12 = vadd.f32 %v4958_v23, %v2872_v11  ;;  %v2867_v16 = vadd.f32 %v3150_v25, %v2866_v13 }
 0x74c   :  { %2890 = vst.msk [vmem:[%s5090_s18 + $0x38] sm:$0xff] %vm5131_vm8, %v2882_v12  ;;  %v2881_v46 = vadd.f32 %v4951_v56, %v2867_v16 }
 0x74e   :  { %2889 = vst.msk [vmem:[%s5090_s18 + $0x30] sm:$0xff] %vm5132_vm2, %v2881_v46 }

</bundles_post_ra>
